<compile_context>
chip_gen: v7x
topology: tpu7x:2x2x1
jax: 0.10.0
libtpu: 0.0.40
codegen_flags: <defaults>
</compile_context>

<pallas_src>
import numpy as np
import jax
import jax.numpy as jnp
from jax.experimental import pallas as pl
from jax.experimental.pallas import tpu as pltpu


# ----------------------------------------------------------------------------
# Deterministic parameter construction (numpy) -- mirrors the PyTorch __init__.
# ----------------------------------------------------------------------------
def waveconvparam(bin_resolution, virtual_wavelength, cycles):
    c = 3e8
    s_z = bin_resolution * c
    samples = int(round(cycles * virtual_wavelength / (bin_resolution * c)))
    num_cycles = samples * s_z / virtual_wavelength
    sigma = 0.3
    grids = np.arange(1, samples + 1, dtype=np.float64)
    sin_wave = np.sin(2.0 * np.pi * (num_cycles * grids) / samples)
    cos_wave = np.cos(2.0 * np.pi * (num_cycles * grids) / samples)
    window = np.exp(-((grids - samples / 2.0) ** 2) / (2.0 * (sigma * samples) ** 2))
    return cos_wave * window, sin_wave * window


def definePsf(sptial_grid, temprol_grid, slope):
    U, V = sptial_grid, temprol_grid
    x = np.linspace(-1.0, 1.0, 2 * U)
    y = np.linspace(-1.0, 1.0, 2 * U)
    z = np.linspace(0.0, 2.0, 2 * V)
    grid_z, grid_y, grid_x = np.meshgrid(z, y, x, indexing="ij")
    psf = np.abs((4.0 * slope) ** 2 * (grid_x ** 2 + grid_y ** 2) - grid_z)
    psf = (psf == psf.min(axis=0, keepdims=True)).astype(np.float64)
    psf = psf / np.sum(psf[:, U, U])
    psf = psf / np.linalg.norm(psf.ravel())
    psf = np.roll(psf, shift=(U, U), axis=(1, 2))
    return psf  # (2T, 2H, 2W)


def resamplingOperator(temprol_grid):
    M = temprol_grid
    row = np.arange(1, M * M + 1, dtype=np.float64)
    col = np.ceil(np.sqrt(row)).astype(np.int64) - 1
    mtx = np.zeros((M * M, M), dtype=np.float64)
    mtx[np.arange(M * M), col] = 1.0
    mtx = mtx / np.sqrt(row)[:, None]
    mtxi = mtx.T.copy()
    for _ in range(int(round(np.log2(M)))):
        mtx = 0.5 * (mtx[0::2, :] + mtx[1::2, :])
        mtxi = 0.5 * (mtxi[:, 0::2] + mtxi[:, 1::2])
    return mtx, mtxi  # (M, M), (M, M)


# ----------------------------------------------------------------------------
# Tiling helpers (hardened + generation-aware per the review)
# ----------------------------------------------------------------------------
def _pick_tile(total, target, quantum):
    """Largest tile <= target that divides `total` and is a multiple of
    `quantum`.  If the axis is already <= target it is kept whole (always a
    legal block).  Raises instead of silently falling back to the full axis
    (which could blow past the VMEM limit)."""
    if total <= target:
        return total
    if total % quantum == 0:
        t = (target // quantum) * quantum
        while t >= quantum:
            if total % t == 0:
                return t
            t -= quantum
    raise ValueError(
        f"_pick_tile: no legal tile for axis={total} "
        f"(target={target}, quantum={quantum}); the axis must either be a "
        f"multiple of {quantum} or small enough to keep whole.")


def _device_config():
    """Generation-aware (vmem_limit_bytes, matmul_s_tile, conv_lane_tile)."""
    vmem_phys = None
    try:
        info = pltpu.get_tpu_info()
        vmem_phys = getattr(info, "vmem_capacity_bytes", None)
    except Exception:
        vmem_phys = None
    if vmem_phys is not None and vmem_phys >= 100 * 1024 * 1024:
        # v5e / v6e: 128 MiB physical VMEM -> raise the scoped limit, use big
        # matmul tiles (v5e's 16 MiB scoped default makes the override mandatory).
        return 64 * 1024 * 1024, 4096, 1024
    # v7x (64 MiB per TensorCore) or unknown generation: stay conservative.
    return 44 * 1024 * 1024, 2048, 1024


# ----------------------------------------------------------------------------
# Pallas kernels
# ----------------------------------------------------------------------------
def waveconv_pallas(x_bts, wave_2xk, *, lane_tile, time_chunk, vmem_limit):
    """conv1d along time with the 2-channel (cos/sin) virtual-wave kernel.

    x_bts    : (BD, T, S) f32, S = H*W on the lane axis.
    wave_2xk : (2, K) f32 (already time-reversed, as in the module).
    returns  : (2, BD, T, S) f32  ('same' conv; even-K crop folded in).
    """
    BD, T, S = x_bts.shape
    _, K = wave_2xk.shape
    pad = K // 2
    off = 1 if K % 2 == 0 else 0        # even K: PyTorch crops the first sample

    # Lane tile: cap so (in x2 bufs + out x2 bufs + scratch) fits the limit.
    denom = (6 * T + (T + 2 * pad)) * 4
    cap = max(128, (int(vmem_limit * 0.85) // denom // 128) * 128)
    TS = _pick_tile(S, min(lane_tile, cap), 128)
    CT = min(T, time_chunk)             # 2*CT*TS*4 B <= ~64 KiB -> no spills

    def kernel(x_ref, w_ref, o_ref, xp_ref):
        # Build the zero-padded time column once per grid step in VMEM scratch.
        # NOTE(review): pad rows only *need* writing once per core, but a
        # program_id==0 guard is unsafe under megacore sharding of the
        # parallel grid axes (only one core ever sees (0,0)); the cost is
        # 2*pad rows vs T interior rows (<2%) and hides under the VALU-bound
        # tap loop, so they are written unconditionally.
        if pad > 0:
            xp_ref[0:pad, :] = jnp.zeros((pad, TS), jnp.float32)
            xp_ref[pad + T:pad + T + pad, :] = jnp.zeros((pad, TS), jnp.float32)
        xp_ref[pad:pad + T, :] = x_ref[0]
        # Taps innermost (each shifted slice loaded once, shared by cos & sin
        # accumulators); time processed in small CT-row chunks so both
        # accumulators plus the live slice stay ~24 vregs (no spills).
        for t0 in range(0, T, CT):
            ct = min(CT, T - t0)
            acc_c = jnp.zeros((ct, TS), jnp.float32)
            acc_s = jnp.zeros((ct, TS), jnp.float32)
            for k in range(K):
                sl = xp_ref[t0 + off + k:t0 + off + k + ct, :]
                acc_c = acc_c + sl * w_ref[0, k]
                acc_s = acc_s + sl * w_ref[1, k]
            o_ref[0, 0, t0:t0 + ct, :] = acc_c
            o_ref[1, 0, t0:t0 + ct, :] = acc_s

    return pl.pallas_call(
        kernel,
        out_shape=jax.ShapeDtypeStruct((2, BD, T, S), jnp.float32),
        grid=(BD, S // TS),
        in_specs=[
            pl.BlockSpec((1, T, TS), lambda b, s: (b, 0, s)),
            pl.BlockSpec(memory_space=pltpu.MemorySpace.SMEM),
        ],
        out_specs=pl.BlockSpec((2, 1, T, TS), lambda b, s: (0, b, 0, s)),
        scratch_shapes=[pltpu.VMEM((T + 2 * pad, TS), jnp.float32)],
        compiler_params=pltpu.CompilerParams(
            dimension_semantics=("parallel", "parallel"),
            vmem_limit_bytes=vmem_limit),
    )(x_bts, wave_2xk)


def resample_matmul_pallas(mat_txt, x_bts, *, s_tile, vmem_limit):
    """out[b, :, tile] = mat (T,T) @ x[b, :, tile]; grid = (batch, S tiles).
    The (T,T) operator stays resident in VMEM (constant index_map)."""
    B, T, S = x_bts.shape
    budget = int(vmem_limit * 0.85) - 2 * T * T * mat_txt.dtype.itemsize
    cap = max(128, (budget // (4 * T * 4) // 128) * 128)   # in+out, x2 bufs
    TS = _pick_tile(S, min(s_tile, cap), 128)

    def kernel(m_ref, x_ref, o_ref):
        o_ref[0] = jnp.dot(m_ref[...], x_ref[0].astype(m_ref.dtype),
                           preferred_element_type=jnp.float32)

    bspec = pl.BlockSpec((1, T, TS), lambda b, s: (b, 0, s))
    return pl.pallas_call(
        kernel,
        out_shape=jax.ShapeDtypeStruct((B, T, S), jnp.float32),
        grid=(B, S // TS),
        in_specs=[pl.BlockSpec((T, T), lambda b, s: (0, 0)),  # resident operator
                  bspec],
        out_specs=bspec,
        compiler_params=pltpu.CompilerParams(
            dimension_semantics=("parallel", "parallel"),
            vmem_limit_bytes=vmem_limit),
    )(mat_txt, x_bts)


def mag_resample_pallas(mtxi_txt, vol_2xbts, *, s_tile, vmem_limit):
    """Fused phasor magnitude + inverse-resampling matmul.

    vol_2xbts : (2, BD, T, S) f32 -- channel 0 = cos back-projection,
                channel 1 = sin (both exactly real with the rfft path, so the
                reference's relu((sqrt(sr^2+si^2)+sr)/2) -> sqrt reduces to
                sqrt(cos^2 + sin^2)).
    """
    _, B, T, S = vol_2xbts.shape
    budget = int(vmem_limit * 0.85) - 2 * T * T * mtxi_txt.dtype.itemsize
    cap = max(128, (budget // (6 * T * 4) // 128) * 128)   # 2-ch in + out, x2 bufs
    TS = _pick_tile(S, min(s_tile, cap), 128)

    def kernel(m_ref, v_ref, o_ref):
        c = v_ref[0, 0]
        s = v_ref[1, 0]
        mag = jnp.sqrt(c * c + s * s).astype(m_ref.dtype)
        o_ref[0] = jnp.dot(m_ref[...], mag, preferred_element_type=jnp.float32)

    return pl.pallas_call(
        kernel,
        out_shape=jax.ShapeDtypeStruct((B, T, S), jnp.float32),
        grid=(B, S // TS),
        in_specs=[pl.BlockSpec((T, T), lambda b, s: (0, 0)),  # resident operator
                  pl.BlockSpec((2, 1, T, TS), lambda b, s: (0, b, 0, s))],
        out_specs=pl.BlockSpec((1, T, TS), lambda b, s: (b, 0, s)),
        compiler_params=pltpu.CompilerParams(
            dimension_semantics=("parallel", "parallel"),
            vmem_limit_bytes=vmem_limit),
    )(mtxi_txt, vol_2xbts)


# ----------------------------------------------------------------------------
# Module
# ----------------------------------------------------------------------------
class TFPhasorPallas:
    def __init__(self, spatial=256, crop=512, bin_len=0.01, wall_size=2.0,
                 sampling_coeff=2.0, cycles=5, use_bf16_matmul=False):
        self.spatial_grid = spatial
        self.crop = crop
        assert 2 ** int(np.log2(crop)) == crop
        c = 3e8
        width = wall_size / 2.0
        bin_resolution = bin_len / c
        trange = crop * c * bin_resolution
        s_lamda_limit = wall_size / (spatial - 1)
        virtual_wavelength = sampling_coeff * (s_lamda_limit * 2)
        cos_k, sin_k = waveconvparam(bin_resolution, virtual_wavelength, cycles)
        wave_2xk = np.stack([cos_k, sin_k], axis=0)
        # time-reversed, exactly like virtual_cos_sin_wave_inv_2x1xk
        self.wave_inv_2xk = jnp.asarray(
            np.ascontiguousarray(wave_2xk[:, ::-1]), dtype=jnp.float32)
        self.knum = int(self.wave_inv_2xk.shape[1])

        slope = width / trange
        psf = definePsf(spatial, crop, slope)
        # conj of the PSF spectrum; only the rfft half along the last axis is
        # needed (data and PSF are both real => the filtered volume is real).
        self.invpsf_half = jnp.asarray(
            np.conjugate(np.fft.rfftn(psf)).astype(np.complex64))  # (2T,2H,W+1)

        # bf16 matmul operands (f32 accumulate) are ~2-4x faster on the
        # v6e/v7x MXU and halve operator bytes, but change parity slightly;
        # default OFF per the review's "flagged tradeoff".
        mm_dtype = jnp.bfloat16 if use_bf16_matmul else jnp.float32
        mtx, mtxi = resamplingOperator(crop)
        self.mtx = jnp.asarray(mtx, dtype=mm_dtype)
        self.mtxi = jnp.asarray(mtxi, dtype=mm_dtype)

        # Generation-aware tiling / VMEM limits (v5e/v6e vs v7x).
        self.vmem_limit, self.s_tile, self.conv_lane_tile = _device_config()
        self.conv_time_chunk = 8   # 2*8*1024*4 B = 64 KiB of accumulators

    def __call__(self, feat_bxdxtxhxw):
        b, d, t, h, w = feat_bxdxtxhxw.shape
        assert h == w == self.spatial_grid
        assert t == self.crop
        T, H, W = self.crop, h, w
        BD = b * d
        HW = H * W
        feat = feat_bxdxtxhxw.astype(jnp.float32)

        # --- 1) virtual-wave conv1d along time (Pallas, VPU) -----------------
        x = feat.reshape(BD, T, HW)                              # free reshape
        conv = waveconv_pallas(x, self.wave_inv_2xk,
                               lane_tile=self.conv_lane_tile,
                               time_chunk=self.conv_time_chunk,
                               vmem_limit=self.vmem_limit)       # (2,BD,T,HW)
        data_2bd = conv.reshape(2 * BD, T, HW)                   # free reshape

        # --- 2) resampling matmul (Pallas, MXU, resident (T,T) operator) -----
        tmp2 = resample_matmul_pallas(self.mtx, data_2bd,
                                      s_tile=self.s_tile,
                                      vmem_limit=self.vmem_limit)  # (2BD,T,HW)

        # --- 3-5) FFT filter --------------------------------------------------
        # Zero-pad to (2T,2H,2W) folded into rfftn(s=...).  The conj(PSF)
        # multiply is one fused complex64 elementwise op (no real/imag split
        # round-trips), and irfftn exploits Hermitian symmetry: the
        # back-projected volume is exactly real, matching the reference up to
        # the float noise in its imaginary residue.  torch.fft.fftn also
        # transforms the batch dim, but the filter is constant along batch so
        # the per-batch 3-D transform is mathematically identical.
        # TODO(synk): no Pallas/TPU FFT primitive; jnp.fft (XLA FFT) glue.
        vol = tmp2.reshape(2 * BD, T, H, W)
        spec = jnp.fft.rfftn(vol, s=(2 * T, 2 * H, 2 * W), axes=(1, 2, 3))
        spec = spec * self.invpsf_half                     # (2BD,2T,2H,W+1)
        re = jnp.fft.irfftn(spec, s=(2 * T, 2 * H, 2 * W), axes=(1, 2, 3))

        # crop + stack cos/sin channels: (2BD,T,H,W) -> (2,BD,T,HW), free.
        volc = re[:, :T, :H, :W].reshape(2, BD, T, HW)

        # --- 6) phasor magnitude + inverse resampling matmul (Pallas) --------
        out = mag_resample_pallas(self.mtxi, volc,
                                  s_tile=self.s_tile,
                                  vmem_limit=self.vmem_limit)    # (BD, T, HW)
        return out.reshape(b, d, T, H, W)


if __name__ == "__main__":
    spatial, crop = 8, 16          # small power-of-2 temporal crop
    model = TFPhasorPallas(spatial=spatial, crop=crop, bin_len=0.3,
                           wall_size=2.0, sampling_coeff=2.0, cycles=5)
    key = jax.random.PRNGKey(0)
    # (bnum, dnum, tnum, hnum, wnum) with tnum == crop, hnum == wnum == spatial
    x = jax.random.uniform(key, (2, 2, crop, spatial, spatial),
                           dtype=jnp.float32)
    fwd = jax.jit(model.__call__)
    out = jax.block_until_ready(fwd(x))
    assert out.shape == (2, 2, crop, spatial, spatial)
    assert out.dtype == jnp.float32
    assert bool(jnp.all(jnp.isfinite(out)))
    print("KERNEL_OK")
</pallas_src>

<mosaic_0001>
module attributes {stable_mosaic.version = 11 : i64} {
  func.func @kernel(%arg0: i32, %arg1: i32, %arg2: memref<16x16xf32, #tpu.memory_space<vmem>>, %arg3: memref<1x16x64xf32, #tpu.memory_space<vmem>>, %arg4: memref<1x16x64xf32, #tpu.memory_space<vmem>>) attributes {dimension_semantics = [#tpu.dimension_semantics<parallel>, #tpu.dimension_semantics<parallel>], iteration_bounds = array<i64: 8, 1>, scalar_prefetch = 0 : i64, scratch_operands = 0 : i64, tpu.core_type = #tpu.core_type<tc>, window_params = [{pipeline_mode = #tpu.pipeline_mode<synchronous>, transform_indices = @transform_0, window_bounds = array<i64: 16, 16>}, {transform_indices = @transform_1, window_bounds = array<i64: 1, 16, 64>}, {transform_indices = @transform_2, window_bounds = array<i64: 1, 16, 64>}]} {
    %c0 = arith.constant 0 : index
    %c0_0 = arith.constant 0 : index
    %0 = vector.load %arg2[%c0, %c0_0] : memref<16x16xf32, #tpu.memory_space<vmem>>, vector<16x16xf32>
    %c0_1 = arith.constant 0 : index
    %c0_2 = arith.constant 0 : index
    %c0_3 = arith.constant 0 : index
    %1 = vector.load %arg3[%c0_1, %c0_2, %c0_3] : memref<1x16x64xf32, #tpu.memory_space<vmem>>, vector<1x16x64xf32>
    %2 = vector.shape_cast %1 : vector<1x16x64xf32> to vector<16x64xf32>
    %cst = arith.constant dense<0.000000e+00> : vector<16x64xf32>
    %3 = tpu.matmul %0, %2, %cst {dimension_numbers = #tpu.dot_dimension_numbers<[1], [0], [0], [1], [0, 0, 1, 1], [], []>} : vector<16x16xf32>, vector<16x64xf32>, vector<16x64xf32> -> vector<16x64xf32>
    %c0_4 = arith.constant 0 : index
    %c0_5 = arith.constant 0 : index
    %c0_6 = arith.constant 0 : index
    %4 = vector.load %arg4[%c0_4, %c0_5, %c0_6] : memref<1x16x64xf32, #tpu.memory_space<vmem>>, vector<1x16x64xf32>
    %5 = vector.shape_cast %4 : vector<1x16x64xf32> to vector<16x64xf32>
    %6 = vector.shape_cast %3 : vector<16x64xf32> to vector<1x16x64xf32>
    tpu.vector_store %arg4[%c0_4, %c0_5, %c0_6], %6 {strides = array<i32>} : memref<1x16x64xf32, #tpu.memory_space<vmem>>, vector<1x16x64xf32>,
    return
  }
  func.func @transform_0(%arg0: i32, %arg1: i32) -> (i32, i32) {
    %c0_i32 = arith.constant 0 : i32
    %c0_i32_0 = arith.constant 0 : i32
    %c0_i32_1 = arith.constant 0 : i32
    return %c0_i32, %c0_i32_0 : i32, i32
  }
  func.func @transform_1(%arg0: i32, %arg1: i32) -> (i32, i32, i32) {
    %c0_i32 = arith.constant 0 : i32
    %c0_i32_0 = arith.constant 0 : i32
    return %arg0, %c0_i32, %arg1 : i32, i32, i32
  }
  func.func @transform_2(%arg0: i32, %arg1: i32) -> (i32, i32, i32) {
    %c0_i32 = arith.constant 0 : i32
    %c0_i32_0 = arith.constant 0 : i32
    return %arg0, %c0_i32, %arg1 : i32, i32, i32
  }
}

module attributes {stable_mosaic.version = 11 : i64} {
  func.func @kernel(%arg0: i32, %arg1: i32, %arg2: memref<1x16x64xf32, #tpu.memory_space<vmem>>, %arg3: memref<2x19xf32, #tpu.memory_space<smem>>, %arg4: memref<2x1x16x64xf32, #tpu.memory_space<vmem>>, %arg5: memref<34x64xf32, #tpu.memory_space<vmem>>) attributes {dimension_semantics = [#tpu.dimension_semantics<parallel>, #tpu.dimension_semantics<parallel>], iteration_bounds = array<i64: 4, 1>, scalar_prefetch = 0 : i64, scratch_operands = 1 : i64, tpu.core_type = #tpu.core_type<tc>, window_params = [{transform_indices = @transform_0, window_bounds = array<i64: 1, 16, 64>}, {transform_indices = @transform_1, window_bounds = array<i64: 2, 19>}, {transform_indices = @transform_2, window_bounds = array<i64: 2, 1, 16, 64>}]} {
    %cst = arith.constant 0.000000e+00 : f32
    %0 = vector.broadcast %cst : f32 to vector<9x64xf32>
    %c0 = arith.constant 0 : index
    %c0_0 = arith.constant 0 : index
    %1 = vector.load %arg5[%c0, %c0_0] : memref<34x64xf32, #tpu.memory_space<vmem>>, vector<9x64xf32>
    tpu.vector_store %arg5[%c0, %c0_0], %0 {strides = array<i32>} : memref<34x64xf32, #tpu.memory_space<vmem>>, vector<9x64xf32>,
    %cst_1 = arith.constant 0.000000e+00 : f32
    %2 = vector.broadcast %cst_1 : f32 to vector<9x64xf32>
    %c25 = arith.constant 25 : index
    %c0_2 = arith.constant 0 : index
    %3 = vector.load %arg5[%c25, %c0_2] : memref<34x64xf32, #tpu.memory_space<vmem>>, vector<9x64xf32>
    tpu.vector_store %arg5[%c25, %c0_2], %2 {strides = array<i32>} : memref<34x64xf32, #tpu.memory_space<vmem>>, vector<9x64xf32>,
    %c0_3 = arith.constant 0 : index
    %c0_4 = arith.constant 0 : index
    %c0_5 = arith.constant 0 : index
    %4 = vector.load %arg2[%c0_3, %c0_4, %c0_5] : memref<1x16x64xf32, #tpu.memory_space<vmem>>, vector<1x16x64xf32>
    %5 = vector.shape_cast %4 : vector<1x16x64xf32> to vector<16x64xf32>
    %c9 = arith.constant 9 : index
    %c0_6 = arith.constant 0 : index
    %6 = vector.load %arg5[%c9, %c0_6] : memref<34x64xf32, #tpu.memory_space<vmem>>, vector<16x64xf32>
    tpu.vector_store %arg5[%c9, %c0_6], %5 {strides = array<i32>} : memref<34x64xf32, #tpu.memory_space<vmem>>, vector<16x64xf32>,
    %cst_7 = arith.constant 0.000000e+00 : f32
    %7 = vector.broadcast %cst_7 : f32 to vector<8x64xf32>
    %cst_8 = arith.constant 0.000000e+00 : f32
    %8 = vector.broadcast %cst_8 : f32 to vector<8x64xf32>
    %c0_9 = arith.constant 0 : index
    %c0_10 = arith.constant 0 : index
    %9 = vector.load %arg5[%c0_9, %c0_10] : memref<34x64xf32, #tpu.memory_space<vmem>>, vector<8x64xf32>
    %c0_11 = arith.constant 0 : index
    %c0_12 = arith.constant 0 : index
    %10 = memref.load %arg3[%c0_11, %c0_12] : memref<2x19xf32, #tpu.memory_space<smem>>
    %11 = vector.broadcast %10 : f32 to vector<8x64xf32>
    %12 = arith.mulf %9, %11 : vector<8x64xf32>
    %13 = arith.addf %7, %12 : vector<8x64xf32>
    %c1 = arith.constant 1 : index
    %c0_13 = arith.constant 0 : index
    %14 = memref.load %arg3[%c1, %c0_13] : memref<2x19xf32, #tpu.memory_space<smem>>
    %15 = vector.broadcast %14 : f32 to vector<8x64xf32>
    %16 = arith.mulf %9, %15 : vector<8x64xf32>
    %17 = arith.addf %8, %16 : vector<8x64xf32>
    %c1_14 = arith.constant 1 : index
    %c0_15 = arith.constant 0 : index
    %18 = vector.load %arg5[%c1_14, %c0_15] : memref<34x64xf32, #tpu.memory_space<vmem>>, vector<8x64xf32>
    %c0_16 = arith.constant 0 : index
    %c1_17 = arith.constant 1 : index
    %19 = memref.load %arg3[%c0_16, %c1_17] : memref<2x19xf32, #tpu.memory_space<smem>>
    %20 = vector.broadcast %19 : f32 to vector<8x64xf32>
    %21 = arith.mulf %18, %20 : vector<8x64xf32>
    %22 = arith.addf %13, %21 : vector<8x64xf32>
    %c1_18 = arith.constant 1 : index
    %c1_19 = arith.constant 1 : index
    %23 = memref.load %arg3[%c1_18, %c1_19] : memref<2x19xf32, #tpu.memory_space<smem>>
    %24 = vector.broadcast %23 : f32 to vector<8x64xf32>
    %25 = arith.mulf %18, %24 : vector<8x64xf32>
    %26 = arith.addf %17, %25 : vector<8x64xf32>
    %c2 = arith.constant 2 : index
    %c0_20 = arith.constant 0 : index
    %27 = vector.load %arg5[%c2, %c0_20] : memref<34x64xf32, #tpu.memory_space<vmem>>, vector<8x64xf32>
    %c0_21 = arith.constant 0 : index
    %c2_22 = arith.constant 2 : index
    %28 = memref.load %arg3[%c0_21, %c2_22] : memref<2x19xf32, #tpu.memory_space<smem>>
    %29 = vector.broadcast %28 : f32 to vector<8x64xf32>
    %30 = arith.mulf %27, %29 : vector<8x64xf32>
    %31 = arith.addf %22, %30 : vector<8x64xf32>
    %c1_23 = arith.constant 1 : index
    %c2_24 = arith.constant 2 : index
    %32 = memref.load %arg3[%c1_23, %c2_24] : memref<2x19xf32, #tpu.memory_space<smem>>
    %33 = vector.broadcast %32 : f32 to vector<8x64xf32>
    %34 = arith.mulf %27, %33 : vector<8x64xf32>
    %35 = arith.addf %26, %34 : vector<8x64xf32>
    %c3 = arith.constant 3 : index
    %c0_25 = arith.constant 0 : index
    %36 = vector.load %arg5[%c3, %c0_25] : memref<34x64xf32, #tpu.memory_space<vmem>>, vector<8x64xf32>
    %c0_26 = arith.constant 0 : index
    %c3_27 = arith.constant 3 : index
    %37 = memref.load %arg3[%c0_26, %c3_27] : memref<2x19xf32, #tpu.memory_space<smem>>
    %38 = vector.broadcast %37 : f32 to vector<8x64xf32>
    %39 = arith.mulf %36, %38 : vector<8x64xf32>
    %40 = arith.addf %31, %39 : vector<8x64xf32>
    %c1_28 = arith.constant 1 : index
    %c3_29 = arith.constant 3 : index
    %41 = memref.load %arg3[%c1_28, %c3_29] : memref<2x19xf32, #tpu.memory_space<smem>>
    %42 = vector.broadcast %41 : f32 to vector<8x64xf32>
    %43 = arith.mulf %36, %42 : vector<8x64xf32>
    %44 = arith.addf %35, %43 : vector<8x64xf32>
    %c4 = arith.constant 4 : index
    %c0_30 = arith.constant 0 : index
    %45 = vector.load %arg5[%c4, %c0_30] : memref<34x64xf32, #tpu.memory_space<vmem>>, vector<8x64xf32>
    %c0_31 = arith.constant 0 : index
    %c4_32 = arith.constant 4 : index
    %46 = memref.load %arg3[%c0_31, %c4_32] : memref<2x19xf32, #tpu.memory_space<smem>>
    %47 = vector.broadcast %46 : f32 to vector<8x64xf32>
    %48 = arith.mulf %45, %47 : vector<8x64xf32>
    %49 = arith.addf %40, %48 : vector<8x64xf32>
    %c1_33 = arith.constant 1 : index
    %c4_34 = arith.constant 4 : index
    %50 = memref.load %arg3[%c1_33, %c4_34] : memref<2x19xf32, #tpu.memory_space<smem>>
    %51 = vector.broadcast %50 : f32 to vector<8x64xf32>
    %52 = arith.mulf %45, %51 : vector<8x64xf32>
    %53 = arith.addf %44, %52 : vector<8x64xf32>
    %c5 = arith.constant 5 : index
    %c0_35 = arith.constant 0 : index
    %54 = vector.load %arg5[%c5, %c0_35] : memref<34x64xf32, #tpu.memory_space<vmem>>, vector<8x64xf32>
    %c0_36 = arith.constant 0 : index
    %c5_37 = arith.constant 5 : index
    %55 = memref.load %arg3[%c0_36, %c5_37] : memref<2x19xf32, #tpu.memory_space<smem>>
    %56 = vector.broadcast %55 : f32 to vector<8x64xf32>
    %57 = arith.mulf %54, %56 : vector<8x64xf32>
    %58 = arith.addf %49, %57 : vector<8x64xf32>
    %c1_38 = arith.constant 1 : index
    %c5_39 = arith.constant 5 : index
    %59 = memref.load %arg3[%c1_38, %c5_39] : memref<2x19xf32, #tpu.memory_space<smem>>
    %60 = vector.broadcast %59 : f32 to vector<8x64xf32>
    %61 = arith.mulf %54, %60 : vector<8x64xf32>
    %62 = arith.addf %53, %61 : vector<8x64xf32>
    %c6 = arith.constant 6 : index
    %c0_40 = arith.constant 0 : index
    %63 = vector.load %arg5[%c6, %c0_40] : memref<34x64xf32, #tpu.memory_space<vmem>>, vector<8x64xf32>
    %c0_41 = arith.constant 0 : index
    %c6_42 = arith.constant 6 : index
    %64 = memref.load %arg3[%c0_41, %c6_42] : memref<2x19xf32, #tpu.memory_space<smem>>
    %65 = vector.broadcast %64 : f32 to vector<8x64xf32>
    %66 = arith.mulf %63, %65 : vector<8x64xf32>
    %67 = arith.addf %58, %66 : vector<8x64xf32>
    %c1_43 = arith.constant 1 : index
    %c6_44 = arith.constant 6 : index
    %68 = memref.load %arg3[%c1_43, %c6_44] : memref<2x19xf32, #tpu.memory_space<smem>>
    %69 = vector.broadcast %68 : f32 to vector<8x64xf32>
    %70 = arith.mulf %63, %69 : vector<8x64xf32>
    %71 = arith.addf %62, %70 : vector<8x64xf32>
    %c7 = arith.constant 7 : index
    %c0_45 = arith.constant 0 : index
    %72 = vector.load %arg5[%c7, %c0_45] : memref<34x64xf32, #tpu.memory_space<vmem>>, vector<8x64xf32>
    %c0_46 = arith.constant 0 : index
    %c7_47 = arith.constant 7 : index
    %73 = memref.load %arg3[%c0_46, %c7_47] : memref<2x19xf32, #tpu.memory_space<smem>>
    %74 = vector.broadcast %73 : f32 to vector<8x64xf32>
    %75 = arith.mulf %72, %74 : vector<8x64xf32>
    %76 = arith.addf %67, %75 : vector<8x64xf32>
    %c1_48 = arith.constant 1 : index
    %c7_49 = arith.constant 7 : index
    %77 = memref.load %arg3[%c1_48, %c7_49] : memref<2x19xf32, #tpu.memory_space<smem>>
    %78 = vector.broadcast %77 : f32 to vector<8x64xf32>
    %79 = arith.mulf %72, %78 : vector<8x64xf32>
    %80 = arith.addf %71, %79 : vector<8x64xf32>
    %c8 = arith.constant 8 : index
    %c0_50 = arith.constant 0 : index
    %81 = vector.load %arg5[%c8, %c0_50] : memref<34x64xf32, #tpu.memory_space<vmem>>, vector<8x64xf32>
    %c0_51 = arith.constant 0 : index
    %c8_52 = arith.constant 8 : index
    %82 = memref.load %arg3[%c0_51, %c8_52] : memref<2x19xf32, #tpu.memory_space<smem>>
    %83 = vector.broadcast %82 : f32 to vector<8x64xf32>
    %84 = arith.mulf %81, %83 : vector<8x64xf32>
    %85 = arith.addf %76, %84 : vector<8x64xf32>
    %c1_53 = arith.constant 1 : index
    %c8_54 = arith.constant 8 : index
    %86 = memref.load %arg3[%c1_53, %c8_54] : memref<2x19xf32, #tpu.memory_space<smem>>
    %87 = vector.broadcast %86 : f32 to vector<8x64xf32>
    %88 = arith.mulf %81, %87 : vector<8x64xf32>
    %89 = arith.addf %80, %88 : vector<8x64xf32>
    %c9_55 = arith.constant 9 : index
    %c0_56 = arith.constant 0 : index
    %90 = vector.load %arg5[%c9_55, %c0_56] : memref<34x64xf32, #tpu.memory_space<vmem>>, vector<8x64xf32>
    %c0_57 = arith.constant 0 : index
    %c9_58 = arith.constant 9 : index
    %91 = memref.load %arg3[%c0_57, %c9_58] : memref<2x19xf32, #tpu.memory_space<smem>>
    %92 = vector.broadcast %91 : f32 to vector<8x64xf32>
    %93 = arith.mulf %90, %92 : vector<8x64xf32>
    %94 = arith.addf %85, %93 : vector<8x64xf32>
    %c1_59 = arith.constant 1 : index
    %c9_60 = arith.constant 9 : index
    %95 = memref.load %arg3[%c1_59, %c9_60] : memref<2x19xf32, #tpu.memory_space<smem>>
    %96 = vector.broadcast %95 : f32 to vector<8x64xf32>
    %97 = arith.mulf %90, %96 : vector<8x64xf32>
    %98 = arith.addf %89, %97 : vector<8x64xf32>
    %c10 = arith.constant 10 : index
    %c0_61 = arith.constant 0 : index
    %99 = vector.load %arg5[%c10, %c0_61] : memref<34x64xf32, #tpu.memory_space<vmem>>, vector<8x64xf32>
    %c0_62 = arith.constant 0 : index
    %c10_63 = arith.constant 10 : index
    %100 = memref.load %arg3[%c0_62, %c10_63] : memref<2x19xf32, #tpu.memory_space<smem>>
    %101 = vector.broadcast %100 : f32 to vector<8x64xf32>
    %102 = arith.mulf %99, %101 : vector<8x64xf32>
    %103 = arith.addf %94, %102 : vector<8x64xf32>
    %c1_64 = arith.constant 1 : index
    %c10_65 = arith.constant 10 : index
    %104 = memref.load %arg3[%c1_64, %c10_65] : memref<2x19xf32, #tpu.memory_space<smem>>
    %105 = vector.broadcast %104 : f32 to vector<8x64xf32>
    %106 = arith.mulf %99, %105 : vector<8x64xf32>
    %107 = arith.addf %98, %106 : vector<8x64xf32>
    %c11 = arith.constant 11 : index
    %c0_66 = arith.constant 0 : index
    %108 = vector.load %arg5[%c11, %c0_66] : memref<34x64xf32, #tpu.memory_space<vmem>>, vector<8x64xf32>
    %c0_67 = arith.constant 0 : index
    %c11_68 = arith.constant 11 : index
    %109 = memref.load %arg3[%c0_67, %c11_68] : memref<2x19xf32, #tpu.memory_space<smem>>
    %110 = vector.broadcast %109 : f32 to vector<8x64xf32>
    %111 = arith.mulf %108, %110 : vector<8x64xf32>
    %112 = arith.addf %103, %111 : vector<8x64xf32>
    %c1_69 = arith.constant 1 : index
    %c11_70 = arith.constant 11 : index
    %113 = memref.load %arg3[%c1_69, %c11_70] : memref<2x19xf32, #tpu.memory_space<smem>>
    %114 = vector.broadcast %113 : f32 to vector<8x64xf32>
    %115 = arith.mulf %108, %114 : vector<8x64xf32>
    %116 = arith.addf %107, %115 : vector<8x64xf32>
    %c12 = arith.constant 12 : index
    %c0_71 = arith.constant 0 : index
    %117 = vector.load %arg5[%c12, %c0_71] : memref<34x64xf32, #tpu.memory_space<vmem>>, vector<8x64xf32>
    %c0_72 = arith.constant 0 : index
    %c12_73 = arith.constant 12 : index
    %118 = memref.load %arg3[%c0_72, %c12_73] : memref<2x19xf32, #tpu.memory_space<smem>>
    %119 = vector.broadcast %118 : f32 to vector<8x64xf32>
    %120 = arith.mulf %117, %119 : vector<8x64xf32>
    %121 = arith.addf %112, %120 : vector<8x64xf32>
    %c1_74 = arith.constant 1 : index
    %c12_75 = arith.constant 12 : index
    %122 = memref.load %arg3[%c1_74, %c12_75] : memref<2x19xf32, #tpu.memory_space<smem>>
    %123 = vector.broadcast %122 : f32 to vector<8x64xf32>
    %124 = arith.mulf %117, %123 : vector<8x64xf32>
    %125 = arith.addf %116, %124 : vector<8x64xf32>
    %c13 = arith.constant 13 : index
    %c0_76 = arith.constant 0 : index
    %126 = vector.load %arg5[%c13, %c0_76] : memref<34x64xf32, #tpu.memory_space<vmem>>, vector<8x64xf32>
    %c0_77 = arith.constant 0 : index
    %c13_78 = arith.constant 13 : index
    %127 = memref.load %arg3[%c0_77, %c13_78] : memref<2x19xf32, #tpu.memory_space<smem>>
    %128 = vector.broadcast %127 : f32 to vector<8x64xf32>
    %129 = arith.mulf %126, %128 : vector<8x64xf32>
    %130 = arith.addf %121, %129 : vector<8x64xf32>
    %c1_79 = arith.constant 1 : index
    %c13_80 = arith.constant 13 : index
    %131 = memref.load %arg3[%c1_79, %c13_80] : memref<2x19xf32, #tpu.memory_space<smem>>
    %132 = vector.broadcast %131 : f32 to vector<8x64xf32>
    %133 = arith.mulf %126, %132 : vector<8x64xf32>
    %134 = arith.addf %125, %133 : vector<8x64xf32>
    %c14 = arith.constant 14 : index
    %c0_81 = arith.constant 0 : index
    %135 = vector.load %arg5[%c14, %c0_81] : memref<34x64xf32, #tpu.memory_space<vmem>>, vector<8x64xf32>
    %c0_82 = arith.constant 0 : index
    %c14_83 = arith.constant 14 : index
    %136 = memref.load %arg3[%c0_82, %c14_83] : memref<2x19xf32, #tpu.memory_space<smem>>
    %137 = vector.broadcast %136 : f32 to vector<8x64xf32>
    %138 = arith.mulf %135, %137 : vector<8x64xf32>
    %139 = arith.addf %130, %138 : vector<8x64xf32>
    %c1_84 = arith.constant 1 : index
    %c14_85 = arith.constant 14 : index
    %140 = memref.load %arg3[%c1_84, %c14_85] : memref<2x19xf32, #tpu.memory_space<smem>>
    %141 = vector.broadcast %140 : f32 to vector<8x64xf32>
    %142 = arith.mulf %135, %141 : vector<8x64xf32>
    %143 = arith.addf %134, %142 : vector<8x64xf32>
    %c15 = arith.constant 15 : index
    %c0_86 = arith.constant 0 : index
    %144 = vector.load %arg5[%c15, %c0_86] : memref<34x64xf32, #tpu.memory_space<vmem>>, vector<8x64xf32>
    %c0_87 = arith.constant 0 : index
    %c15_88 = arith.constant 15 : index
    %145 = memref.load %arg3[%c0_87, %c15_88] : memref<2x19xf32, #tpu.memory_space<smem>>
    %146 = vector.broadcast %145 : f32 to vector<8x64xf32>
    %147 = arith.mulf %144, %146 : vector<8x64xf32>
    %148 = arith.addf %139, %147 : vector<8x64xf32>
    %c1_89 = arith.constant 1 : index
    %c15_90 = arith.constant 15 : index
    %149 = memref.load %arg3[%c1_89, %c15_90] : memref<2x19xf32, #tpu.memory_space<smem>>
    %150 = vector.broadcast %149 : f32 to vector<8x64xf32>
    %151 = arith.mulf %144, %150 : vector<8x64xf32>
    %152 = arith.addf %143, %151 : vector<8x64xf32>
    %c16 = arith.constant 16 : index
    %c0_91 = arith.constant 0 : index
    %153 = vector.load %arg5[%c16, %c0_91] : memref<34x64xf32, #tpu.memory_space<vmem>>, vector<8x64xf32>
    %c0_92 = arith.constant 0 : index
    %c16_93 = arith.constant 16 : index
    %154 = memref.load %arg3[%c0_92, %c16_93] : memref<2x19xf32, #tpu.memory_space<smem>>
    %155 = vector.broadcast %154 : f32 to vector<8x64xf32>
    %156 = arith.mulf %153, %155 : vector<8x64xf32>
    %157 = arith.addf %148, %156 : vector<8x64xf32>
    %c1_94 = arith.constant 1 : index
    %c16_95 = arith.constant 16 : index
    %158 = memref.load %arg3[%c1_94, %c16_95] : memref<2x19xf32, #tpu.memory_space<smem>>
    %159 = vector.broadcast %158 : f32 to vector<8x64xf32>
    %160 = arith.mulf %153, %159 : vector<8x64xf32>
    %161 = arith.addf %152, %160 : vector<8x64xf32>
    %c17 = arith.constant 17 : index
    %c0_96 = arith.constant 0 : index
    %162 = vector.load %arg5[%c17, %c0_96] : memref<34x64xf32, #tpu.memory_space<vmem>>, vector<8x64xf32>
    %c0_97 = arith.constant 0 : index
    %c17_98 = arith.constant 17 : index
    %163 = memref.load %arg3[%c0_97, %c17_98] : memref<2x19xf32, #tpu.memory_space<smem>>
    %164 = vector.broadcast %163 : f32 to vector<8x64xf32>
    %165 = arith.mulf %162, %164 : vector<8x64xf32>
    %166 = arith.addf %157, %165 : vector<8x64xf32>
    %c1_99 = arith.constant 1 : index
    %c17_100 = arith.constant 17 : index
    %167 = memref.load %arg3[%c1_99, %c17_100] : memref<2x19xf32, #tpu.memory_space<smem>>
    %168 = vector.broadcast %167 : f32 to vector<8x64xf32>
    %169 = arith.mulf %162, %168 : vector<8x64xf32>
    %170 = arith.addf %161, %169 : vector<8x64xf32>
    %c18 = arith.constant 18 : index
    %c0_101 = arith.constant 0 : index
    %171 = vector.load %arg5[%c18, %c0_101] : memref<34x64xf32, #tpu.memory_space<vmem>>, vector<8x64xf32>
    %c0_102 = arith.constant 0 : index
    %c18_103 = arith.constant 18 : index
    %172 = memref.load %arg3[%c0_102, %c18_103] : memref<2x19xf32, #tpu.memory_space<smem>>
    %173 = vector.broadcast %172 : f32 to vector<8x64xf32>
    %174 = arith.mulf %171, %173 : vector<8x64xf32>
    %175 = arith.addf %166, %174 : vector<8x64xf32>
    %c1_104 = arith.constant 1 : index
    %c18_105 = arith.constant 18 : index
    %176 = memref.load %arg3[%c1_104, %c18_105] : memref<2x19xf32, #tpu.memory_space<smem>>
    %177 = vector.broadcast %176 : f32 to vector<8x64xf32>
    %178 = arith.mulf %171, %177 : vector<8x64xf32>
    %179 = arith.addf %170, %178 : vector<8x64xf32>
    %c0_106 = arith.constant 0 : index
    %c0_107 = arith.constant 0 : index
    %c0_108 = arith.constant 0 : index
    %c0_109 = arith.constant 0 : index
    %180 = vector.load %arg4[%c0_106, %c0_107, %c0_108, %c0_109] : memref<2x1x16x64xf32, #tpu.memory_space<vmem>>, vector<1x1x8x64xf32>
    %181 = vector.shape_cast %180 : vector<1x1x8x64xf32> to vector<8x64xf32>
    %182 = vector.shape_cast %175 : vector<8x64xf32> to vector<1x1x8x64xf32>
    tpu.vector_store %arg4[%c0_106, %c0_107, %c0_108, %c0_109], %182 {strides = array<i32>} : memref<2x1x16x64xf32, #tpu.memory_space<vmem>>, vector<1x1x8x64xf32>,
    %c1_110 = arith.constant 1 : index
    %c0_111 = arith.constant 0 : index
    %c0_112 = arith.constant 0 : index
    %c0_113 = arith.constant 0 : index
    %183 = vector.load %arg4[%c1_110, %c0_111, %c0_112, %c0_113] : memref<2x1x16x64xf32, #tpu.memory_space<vmem>>, vector<1x1x8x64xf32>
    %184 = vector.shape_cast %183 : vector<1x1x8x64xf32> to vector<8x64xf32>
    %185 = vector.shape_cast %179 : vector<8x64xf32> to vector<1x1x8x64xf32>
    tpu.vector_store %arg4[%c1_110, %c0_111, %c0_112, %c0_113], %185 {strides = array<i32>} : memref<2x1x16x64xf32, #tpu.memory_space<vmem>>, vector<1x1x8x64xf32>,
    %cst_114 = arith.constant 0.000000e+00 : f32
    %186 = vector.broadcast %cst_114 : f32 to vector<8x64xf32>
    %cst_115 = arith.constant 0.000000e+00 : f32
    %187 = vector.broadcast %cst_115 : f32 to vector<8x64xf32>
    %c8_116 = arith.constant 8 : index
    %c0_117 = arith.constant 0 : index
    %188 = vector.load %arg5[%c8_116, %c0_117] : memref<34x64xf32, #tpu.memory_space<vmem>>, vector<8x64xf32>
    %c0_118 = arith.constant 0 : index
    %c0_119 = arith.constant 0 : index
    %189 = memref.load %arg3[%c0_118, %c0_119] : memref<2x19xf32, #tpu.memory_space<smem>>
    %190 = vector.broadcast %189 : f32 to vector<8x64xf32>
    %191 = arith.mulf %188, %190 : vector<8x64xf32>
    %192 = arith.addf %186, %191 : vector<8x64xf32>
    %c1_120 = arith.constant 1 : index
    %c0_121 = arith.constant 0 : index
    %193 = memref.load %arg3[%c1_120, %c0_121] : memref<2x19xf32, #tpu.memory_space<smem>>
    %194 = vector.broadcast %193 : f32 to vector<8x64xf32>
    %195 = arith.mulf %188, %194 : vector<8x64xf32>
    %196 = arith.addf %187, %195 : vector<8x64xf32>
    %c9_122 = arith.constant 9 : index
    %c0_123 = arith.constant 0 : index
    %197 = vector.load %arg5[%c9_122, %c0_123] : memref<34x64xf32, #tpu.memory_space<vmem>>, vector<8x64xf32>
    %c0_124 = arith.constant 0 : index
    %c1_125 = arith.constant 1 : index
    %198 = memref.load %arg3[%c0_124, %c1_125] : memref<2x19xf32, #tpu.memory_space<smem>>
    %199 = vector.broadcast %198 : f32 to vector<8x64xf32>
    %200 = arith.mulf %197, %199 : vector<8x64xf32>
    %201 = arith.addf %192, %200 : vector<8x64xf32>
    %c1_126 = arith.constant 1 : index
    %c1_127 = arith.constant 1 : index
    %202 = memref.load %arg3[%c1_126, %c1_127] : memref<2x19xf32, #tpu.memory_space<smem>>
    %203 = vector.broadcast %202 : f32 to vector<8x64xf32>
    %204 = arith.mulf %197, %203 : vector<8x64xf32>
    %205 = arith.addf %196, %204 : vector<8x64xf32>
    %c10_128 = arith.constant 10 : index
    %c0_129 = arith.constant 0 : index
    %206 = vector.load %arg5[%c10_128, %c0_129] : memref<34x64xf32, #tpu.memory_space<vmem>>, vector<8x64xf32>
    %c0_130 = arith.constant 0 : index
    %c2_131 = arith.constant 2 : index
    %207 = memref.load %arg3[%c0_130, %c2_131] : memref<2x19xf32, #tpu.memory_space<smem>>
    %208 = vector.broadcast %207 : f32 to vector<8x64xf32>
    %209 = arith.mulf %206, %208 : vector<8x64xf32>
    %210 = arith.addf %201, %209 : vector<8x64xf32>
    %c1_132 = arith.constant 1 : index
    %c2_133 = arith.constant 2 : index
    %211 = memref.load %arg3[%c1_132, %c2_133] : memref<2x19xf32, #tpu.memory_space<smem>>
    %212 = vector.broadcast %211 : f32 to vector<8x64xf32>
    %213 = arith.mulf %206, %212 : vector<8x64xf32>
    %214 = arith.addf %205, %213 : vector<8x64xf32>
    %c11_134 = arith.constant 11 : index
    %c0_135 = arith.constant 0 : index
    %215 = vector.load %arg5[%c11_134, %c0_135] : memref<34x64xf32, #tpu.memory_space<vmem>>, vector<8x64xf32>
    %c0_136 = arith.constant 0 : index
    %c3_137 = arith.constant 3 : index
    %216 = memref.load %arg3[%c0_136, %c3_137] : memref<2x19xf32, #tpu.memory_space<smem>>
    %217 = vector.broadcast %216 : f32 to vector<8x64xf32>
    %218 = arith.mulf %215, %217 : vector<8x64xf32>
    %219 = arith.addf %210, %218 : vector<8x64xf32>
    %c1_138 = arith.constant 1 : index
    %c3_139 = arith.constant 3 : index
    %220 = memref.load %arg3[%c1_138, %c3_139] : memref<2x19xf32, #tpu.memory_space<smem>>
    %221 = vector.broadcast %220 : f32 to vector<8x64xf32>
    %222 = arith.mulf %215, %221 : vector<8x64xf32>
    %223 = arith.addf %214, %222 : vector<8x64xf32>
    %c12_140 = arith.constant 12 : index
    %c0_141 = arith.constant 0 : index
    %224 = vector.load %arg5[%c12_140, %c0_141] : memref<34x64xf32, #tpu.memory_space<vmem>>, vector<8x64xf32>
    %c0_142 = arith.constant 0 : index
    %c4_143 = arith.constant 4 : index
    %225 = memref.load %arg3[%c0_142, %c4_143] : memref<2x19xf32, #tpu.memory_space<smem>>
    %226 = vector.broadcast %225 : f32 to vector<8x64xf32>
    %227 = arith.mulf %224, %226 : vector<8x64xf32>
    %228 = arith.addf %219, %227 : vector<8x64xf32>
    %c1_144 = arith.constant 1 : index
    %c4_145 = arith.constant 4 : index
    %229 = memref.load %arg3[%c1_144, %c4_145] : memref<2x19xf32, #tpu.memory_space<smem>>
    %230 = vector.broadcast %229 : f32 to vector<8x64xf32>
    %231 = arith.mulf %224, %230 : vector<8x64xf32>
    %232 = arith.addf %223, %231 : vector<8x64xf32>
    %c13_146 = arith.constant 13 : index
    %c0_147 = arith.constant 0 : index
    %233 = vector.load %arg5[%c13_146, %c0_147] : memref<34x64xf32, #tpu.memory_space<vmem>>, vector<8x64xf32>
    %c0_148 = arith.constant 0 : index
    %c5_149 = arith.constant 5 : index
    %234 = memref.load %arg3[%c0_148, %c5_149] : memref<2x19xf32, #tpu.memory_space<smem>>
    %235 = vector.broadcast %234 : f32 to vector<8x64xf32>
    %236 = arith.mulf %233, %235 : vector<8x64xf32>
    %237 = arith.addf %228, %236 : vector<8x64xf32>
    %c1_150 = arith.constant 1 : index
    %c5_151 = arith.constant 5 : index
    %238 = memref.load %arg3[%c1_150, %c5_151] : memref<2x19xf32, #tpu.memory_space<smem>>
    %239 = vector.broadcast %238 : f32 to vector<8x64xf32>
    %240 = arith.mulf %233, %239 : vector<8x64xf32>
    %241 = arith.addf %232, %240 : vector<8x64xf32>
    %c14_152 = arith.constant 14 : index
    %c0_153 = arith.constant 0 : index
    %242 = vector.load %arg5[%c14_152, %c0_153] : memref<34x64xf32, #tpu.memory_space<vmem>>, vector<8x64xf32>
    %c0_154 = arith.constant 0 : index
    %c6_155 = arith.constant 6 : index
    %243 = memref.load %arg3[%c0_154, %c6_155] : memref<2x19xf32, #tpu.memory_space<smem>>
    %244 = vector.broadcast %243 : f32 to vector<8x64xf32>
    %245 = arith.mulf %242, %244 : vector<8x64xf32>
    %246 = arith.addf %237, %245 : vector<8x64xf32>
    %c1_156 = arith.constant 1 : index
    %c6_157 = arith.constant 6 : index
    %247 = memref.load %arg3[%c1_156, %c6_157] : memref<2x19xf32, #tpu.memory_space<smem>>
    %248 = vector.broadcast %247 : f32 to vector<8x64xf32>
    %249 = arith.mulf %242, %248 : vector<8x64xf32>
    %250 = arith.addf %241, %249 : vector<8x64xf32>
    %c15_158 = arith.constant 15 : index
    %c0_159 = arith.constant 0 : index
    %251 = vector.load %arg5[%c15_158, %c0_159] : memref<34x64xf32, #tpu.memory_space<vmem>>, vector<8x64xf32>
    %c0_160 = arith.constant 0 : index
    %c7_161 = arith.constant 7 : index
    %252 = memref.load %arg3[%c0_160, %c7_161] : memref<2x19xf32, #tpu.memory_space<smem>>
    %253 = vector.broadcast %252 : f32 to vector<8x64xf32>
    %254 = arith.mulf %251, %253 : vector<8x64xf32>
    %255 = arith.addf %246, %254 : vector<8x64xf32>
    %c1_162 = arith.constant 1 : index
    %c7_163 = arith.constant 7 : index
    %256 = memref.load %arg3[%c1_162, %c7_163] : memref<2x19xf32, #tpu.memory_space<smem>>
    %257 = vector.broadcast %256 : f32 to vector<8x64xf32>
    %258 = arith.mulf %251, %257 : vector<8x64xf32>
    %259 = arith.addf %250, %258 : vector<8x64xf32>
    %c16_164 = arith.constant 16 : index
    %c0_165 = arith.constant 0 : index
    %260 = vector.load %arg5[%c16_164, %c0_165] : memref<34x64xf32, #tpu.memory_space<vmem>>, vector<8x64xf32>
    %c0_166 = arith.constant 0 : index
    %c8_167 = arith.constant 8 : index
    %261 = memref.load %arg3[%c0_166, %c8_167] : memref<2x19xf32, #tpu.memory_space<smem>>
    %262 = vector.broadcast %261 : f32 to vector<8x64xf32>
    %263 = arith.mulf %260, %262 : vector<8x64xf32>
    %264 = arith.addf %255, %263 : vector<8x64xf32>
    %c1_168 = arith.constant 1 : index
    %c8_169 = arith.constant 8 : index
    %265 = memref.load %arg3[%c1_168, %c8_169] : memref<2x19xf32, #tpu.memory_space<smem>>
    %266 = vector.broadcast %265 : f32 to vector<8x64xf32>
    %267 = arith.mulf %260, %266 : vector<8x64xf32>
    %268 = arith.addf %259, %267 : vector<8x64xf32>
    %c17_170 = arith.constant 17 : index
    %c0_171 = arith.constant 0 : index
    %269 = vector.load %arg5[%c17_170, %c0_171] : memref<34x64xf32, #tpu.memory_space<vmem>>, vector<8x64xf32>
    %c0_172 = arith.constant 0 : index
    %c9_173 = arith.constant 9 : index
    %270 = memref.load %arg3[%c0_172, %c9_173] : memref<2x19xf32, #tpu.memory_space<smem>>
    %271 = vector.broadcast %270 : f32 to vector<8x64xf32>
    %272 = arith.mulf %269, %271 : vector<8x64xf32>
    %273 = arith.addf %264, %272 : vector<8x64xf32>
    %c1_174 = arith.constant 1 : index
    %c9_175 = arith.constant 9 : index
    %274 = memref.load %arg3[%c1_174, %c9_175] : memref<2x19xf32, #tpu.memory_space<smem>>
    %275 = vector.broadcast %274 : f32 to vector<8x64xf32>
    %276 = arith.mulf %269, %275 : vector<8x64xf32>
    %277 = arith.addf %268, %276 : vector<8x64xf32>
    %c18_176 = arith.constant 18 : index
    %c0_177 = arith.constant 0 : index
    %278 = vector.load %arg5[%c18_176, %c0_177] : memref<34x64xf32, #tpu.memory_space<vmem>>, vector<8x64xf32>
    %c0_178 = arith.constant 0 : index
    %c10_179 = arith.constant 10 : index
    %279 = memref.load %arg3[%c0_178, %c10_179] : memref<2x19xf32, #tpu.memory_space<smem>>
    %280 = vector.broadcast %279 : f32 to vector<8x64xf32>
    %281 = arith.mulf %278, %280 : vector<8x64xf32>
    %282 = arith.addf %273, %281 : vector<8x64xf32>
    %c1_180 = arith.constant 1 : index
    %c10_181 = arith.constant 10 : index
    %283 = memref.load %arg3[%c1_180, %c10_181] : memref<2x19xf32, #tpu.memory_space<smem>>
    %284 = vector.broadcast %283 : f32 to vector<8x64xf32>
    %285 = arith.mulf %278, %284 : vector<8x64xf32>
    %286 = arith.addf %277, %285 : vector<8x64xf32>
    %c19 = arith.constant 19 : index
    %c0_182 = arith.constant 0 : index
    %287 = vector.load %arg5[%c19, %c0_182] : memref<34x64xf32, #tpu.memory_space<vmem>>, vector<8x64xf32>
    %c0_183 = arith.constant 0 : index
    %c11_184 = arith.constant 11 : index
    %288 = memref.load %arg3[%c0_183, %c11_184] : memref<2x19xf32, #tpu.memory_space<smem>>
    %289 = vector.broadcast %288 : f32 to vector<8x64xf32>
    %290 = arith.mulf %287, %289 : vector<8x64xf32>
    %291 = arith.addf %282, %290 : vector<8x64xf32>
    %c1_185 = arith.constant 1 : index
    %c11_186 = arith.constant 11 : index
    %292 = memref.load %arg3[%c1_185, %c11_186] : memref<2x19xf32, #tpu.memory_space<smem>>
    %293 = vector.broadcast %292 : f32 to vector<8x64xf32>
    %294 = arith.mulf %287, %293 : vector<8x64xf32>
    %295 = arith.addf %286, %294 : vector<8x64xf32>
    %c20 = arith.constant 20 : index
    %c0_187 = arith.constant 0 : index
    %296 = vector.load %arg5[%c20, %c0_187] : memref<34x64xf32, #tpu.memory_space<vmem>>, vector<8x64xf32>
    %c0_188 = arith.constant 0 : index
    %c12_189 = arith.constant 12 : index
    %297 = memref.load %arg3[%c0_188, %c12_189] : memref<2x19xf32, #tpu.memory_space<smem>>
    %298 = vector.broadcast %297 : f32 to vector<8x64xf32>
    %299 = arith.mulf %296, %298 : vector<8x64xf32>
    %300 = arith.addf %291, %299 : vector<8x64xf32>
    %c1_190 = arith.constant 1 : index
    %c12_191 = arith.constant 12 : index
    %301 = memref.load %arg3[%c1_190, %c12_191] : memref<2x19xf32, #tpu.memory_space<smem>>
    %302 = vector.broadcast %301 : f32 to vector<8x64xf32>
    %303 = arith.mulf %296, %302 : vector<8x64xf32>
    %304 = arith.addf %295, %303 : vector<8x64xf32>
    %c21 = arith.constant 21 : index
    %c0_192 = arith.constant 0 : index
    %305 = vector.load %arg5[%c21, %c0_192] : memref<34x64xf32, #tpu.memory_space<vmem>>, vector<8x64xf32>
    %c0_193 = arith.constant 0 : index
    %c13_194 = arith.constant 13 : index
    %306 = memref.load %arg3[%c0_193, %c13_194] : memref<2x19xf32, #tpu.memory_space<smem>>
    %307 = vector.broadcast %306 : f32 to vector<8x64xf32>
    %308 = arith.mulf %305, %307 : vector<8x64xf32>
    %309 = arith.addf %300, %308 : vector<8x64xf32>
    %c1_195 = arith.constant 1 : index
    %c13_196 = arith.constant 13 : index
    %310 = memref.load %arg3[%c1_195, %c13_196] : memref<2x19xf32, #tpu.memory_space<smem>>
    %311 = vector.broadcast %310 : f32 to vector<8x64xf32>
    %312 = arith.mulf %305, %311 : vector<8x64xf32>
    %313 = arith.addf %304, %312 : vector<8x64xf32>
    %c22 = arith.constant 22 : index
    %c0_197 = arith.constant 0 : index
    %314 = vector.load %arg5[%c22, %c0_197] : memref<34x64xf32, #tpu.memory_space<vmem>>, vector<8x64xf32>
    %c0_198 = arith.constant 0 : index
    %c14_199 = arith.constant 14 : index
    %315 = memref.load %arg3[%c0_198, %c14_199] : memref<2x19xf32, #tpu.memory_space<smem>>
    %316 = vector.broadcast %315 : f32 to vector<8x64xf32>
    %317 = arith.mulf %314, %316 : vector<8x64xf32>
    %318 = arith.addf %309, %317 : vector<8x64xf32>
    %c1_200 = arith.constant 1 : index
    %c14_201 = arith.constant 14 : index
    %319 = memref.load %arg3[%c1_200, %c14_201] : memref<2x19xf32, #tpu.memory_space<smem>>
    %320 = vector.broadcast %319 : f32 to vector<8x64xf32>
    %321 = arith.mulf %314, %320 : vector<8x64xf32>
    %322 = arith.addf %313, %321 : vector<8x64xf32>
    %c23 = arith.constant 23 : index
    %c0_202 = arith.constant 0 : index
    %323 = vector.load %arg5[%c23, %c0_202] : memref<34x64xf32, #tpu.memory_space<vmem>>, vector<8x64xf32>
    %c0_203 = arith.constant 0 : index
    %c15_204 = arith.constant 15 : index
    %324 = memref.load %arg3[%c0_203, %c15_204] : memref<2x19xf32, #tpu.memory_space<smem>>
    %325 = vector.broadcast %324 : f32 to vector<8x64xf32>
    %326 = arith.mulf %323, %325 : vector<8x64xf32>
    %327 = arith.addf %318, %326 : vector<8x64xf32>
    %c1_205 = arith.constant 1 : index
    %c15_206 = arith.constant 15 : index
    %328 = memref.load %arg3[%c1_205, %c15_206] : memref<2x19xf32, #tpu.memory_space<smem>>
    %329 = vector.broadcast %328 : f32 to vector<8x64xf32>
    %330 = arith.mulf %323, %329 : vector<8x64xf32>
    %331 = arith.addf %322, %330 : vector<8x64xf32>
    %c24 = arith.constant 24 : index
    %c0_207 = arith.constant 0 : index
    %332 = vector.load %arg5[%c24, %c0_207] : memref<34x64xf32, #tpu.memory_space<vmem>>, vector<8x64xf32>
    %c0_208 = arith.constant 0 : index
    %c16_209 = arith.constant 16 : index
    %333 = memref.load %arg3[%c0_208, %c16_209] : memref<2x19xf32, #tpu.memory_space<smem>>
    %334 = vector.broadcast %333 : f32 to vector<8x64xf32>
    %335 = arith.mulf %332, %334 : vector<8x64xf32>
    %336 = arith.addf %327, %335 : vector<8x64xf32>
    %c1_210 = arith.constant 1 : index
    %c16_211 = arith.constant 16 : index
    %337 = memref.load %arg3[%c1_210, %c16_211] : memref<2x19xf32, #tpu.memory_space<smem>>
    %338 = vector.broadcast %337 : f32 to vector<8x64xf32>
    %339 = arith.mulf %332, %338 : vector<8x64xf32>
    %340 = arith.addf %331, %339 : vector<8x64xf32>
    %c25_212 = arith.constant 25 : index
    %c0_213 = arith.constant 0 : index
    %341 = vector.load %arg5[%c25_212, %c0_213] : memref<34x64xf32, #tpu.memory_space<vmem>>, vector<8x64xf32>
    %c0_214 = arith.constant 0 : index
    %c17_215 = arith.constant 17 : index
    %342 = memref.load %arg3[%c0_214, %c17_215] : memref<2x19xf32, #tpu.memory_space<smem>>
    %343 = vector.broadcast %342 : f32 to vector<8x64xf32>
    %344 = arith.mulf %341, %343 : vector<8x64xf32>
    %345 = arith.addf %336, %344 : vector<8x64xf32>
    %c1_216 = arith.constant 1 : index
    %c17_217 = arith.constant 17 : index
    %346 = memref.load %arg3[%c1_216, %c17_217] : memref<2x19xf32, #tpu.memory_space<smem>>
    %347 = vector.broadcast %346 : f32 to vector<8x64xf32>
    %348 = arith.mulf %341, %347 : vector<8x64xf32>
    %349 = arith.addf %340, %348 : vector<8x64xf32>
    %c26 = arith.constant 26 : index
    %c0_218 = arith.constant 0 : index
    %350 = vector.load %arg5[%c26, %c0_218] : memref<34x64xf32, #tpu.memory_space<vmem>>, vector<8x64xf32>
    %c0_219 = arith.constant 0 : index
    %c18_220 = arith.constant 18 : index
    %351 = memref.load %arg3[%c0_219, %c18_220] : memref<2x19xf32, #tpu.memory_space<smem>>
    %352 = vector.broadcast %351 : f32 to vector<8x64xf32>
    %353 = arith.mulf %350, %352 : vector<8x64xf32>
    %354 = arith.addf %345, %353 : vector<8x64xf32>
    %c1_221 = arith.constant 1 : index
    %c18_222 = arith.constant 18 : index
    %355 = memref.load %arg3[%c1_221, %c18_222] : memref<2x19xf32, #tpu.memory_space<smem>>
    %356 = vector.broadcast %355 : f32 to vector<8x64xf32>
    %357 = arith.mulf %350, %356 : vector<8x64xf32>
    %358 = arith.addf %349, %357 : vector<8x64xf32>
    %c0_223 = arith.constant 0 : index
    %c0_224 = arith.constant 0 : index
    %c8_225 = arith.constant 8 : index
    %c0_226 = arith.constant 0 : index
    %359 = vector.load %arg4[%c0_223, %c0_224, %c8_225, %c0_226] : memref<2x1x16x64xf32, #tpu.memory_space<vmem>>, vector<1x1x8x64xf32>
    %360 = vector.shape_cast %359 : vector<1x1x8x64xf32> to vector<8x64xf32>
    %361 = vector.shape_cast %354 : vector<8x64xf32> to vector<1x1x8x64xf32>
    tpu.vector_store %arg4[%c0_223, %c0_224, %c8_225, %c0_226], %361 {strides = array<i32>} : memref<2x1x16x64xf32, #tpu.memory_space<vmem>>, vector<1x1x8x64xf32>,
    %c1_227 = arith.constant 1 : index
    %c0_228 = arith.constant 0 : index
    %c8_229 = arith.constant 8 : index
    %c0_230 = arith.constant 0 : index
    %362 = vector.load %arg4[%c1_227, %c0_228, %c8_229, %c0_230] : memref<2x1x16x64xf32, #tpu.memory_space<vmem>>, vector<1x1x8x64xf32>
    %363 = vector.shape_cast %362 : vector<1x1x8x64xf32> to vector<8x64xf32>
    %364 = vector.shape_cast %358 : vector<8x64xf32> to vector<1x1x8x64xf32>
    tpu.vector_store %arg4[%c1_227, %c0_228, %c8_229, %c0_230], %364 {strides = array<i32>} : memref<2x1x16x64xf32, #tpu.memory_space<vmem>>, vector<1x1x8x64xf32>,
    return
  }
  func.func @transform_0(%arg0: i32, %arg1: i32) -> (i32, i32, i32) {
    %c0_i32 = arith.constant 0 : i32
    %c0_i32_0 = arith.constant 0 : i32
    return %arg0, %c0_i32, %arg1 : i32, i32, i32
  }
  func.func @transform_1(%arg0: i32, %arg1: i32) -> (i32, i32) {
    %c0_i32 = arith.constant 0 : i32
    %c0_i32_0 = arith.constant 0 : i32
    %c0_i32_1 = arith.constant 0 : i32
    return %c0_i32, %c0_i32_0 : i32, i32
  }
  func.func @transform_2(%arg0: i32, %arg1: i32) -> (i32, i32, i32, i32) {
    %c0_i32 = arith.constant 0 : i32
    %c0_i32_0 = arith.constant 0 : i32
    %c0_i32_1 = arith.constant 0 : i32
    return %c0_i32, %arg0, %c0_i32_0, %arg1 : i32, i32, i32, i32
  }
}

module attributes {stable_mosaic.version = 11 : i64} {
  func.func @kernel(%arg0: i32, %arg1: i32, %arg2: memref<16x16xf32, #tpu.memory_space<vmem>>, %arg3: memref<2x1x16x64xf32, #tpu.memory_space<vmem>>, %arg4: memref<1x16x64xf32, #tpu.memory_space<vmem>>) attributes {dimension_semantics = [#tpu.dimension_semantics<parallel>, #tpu.dimension_semantics<parallel>], iteration_bounds = array<i64: 4, 1>, scalar_prefetch = 0 : i64, scratch_operands = 0 : i64, tpu.core_type = #tpu.core_type<tc>, window_params = [{pipeline_mode = #tpu.pipeline_mode<synchronous>, transform_indices = @transform_0, window_bounds = array<i64: 16, 16>}, {transform_indices = @transform_1, window_bounds = array<i64: 2, 1, 16, 64>}, {transform_indices = @transform_2, window_bounds = array<i64: 1, 16, 64>}]} {
    %c0 = arith.constant 0 : index
    %c0_0 = arith.constant 0 : index
    %c0_1 = arith.constant 0 : index
    %c0_2 = arith.constant 0 : index
    %0 = vector.load %arg3[%c0, %c0_0, %c0_1, %c0_2] : memref<2x1x16x64xf32, #tpu.memory_space<vmem>>, vector<1x1x16x64xf32>
    %1 = vector.shape_cast %0 : vector<1x1x16x64xf32> to vector<16x64xf32>
    %c1 = arith.constant 1 : index
    %c0_3 = arith.constant 0 : index
    %c0_4 = arith.constant 0 : index
    %c0_5 = arith.constant 0 : index
    %2 = vector.load %arg3[%c1, %c0_3, %c0_4, %c0_5] : memref<2x1x16x64xf32, #tpu.memory_space<vmem>>, vector<1x1x16x64xf32>
    %3 = vector.shape_cast %2 : vector<1x1x16x64xf32> to vector<16x64xf32>
    %4 = arith.mulf %1, %1 : vector<16x64xf32>
    %5 = arith.mulf %3, %3 : vector<16x64xf32>
    %6 = arith.addf %4, %5 : vector<16x64xf32>
    %7 = math.sqrt %6 : vector<16x64xf32>
    %c0_6 = arith.constant 0 : index
    %c0_7 = arith.constant 0 : index
    %8 = vector.load %arg2[%c0_6, %c0_7] : memref<16x16xf32, #tpu.memory_space<vmem>>, vector<16x16xf32>
    %cst = arith.constant dense<0.000000e+00> : vector<16x64xf32>
    %9 = tpu.matmul %8, %7, %cst {dimension_numbers = #tpu.dot_dimension_numbers<[1], [0], [0], [1], [0, 0, 1, 1], [], []>} : vector<16x16xf32>, vector<16x64xf32>, vector<16x64xf32> -> vector<16x64xf32>
    %c0_8 = arith.constant 0 : index
    %c0_9 = arith.constant 0 : index
    %c0_10 = arith.constant 0 : index
    %10 = vector.load %arg4[%c0_8, %c0_9, %c0_10] : memref<1x16x64xf32, #tpu.memory_space<vmem>>, vector<1x16x64xf32>
    %11 = vector.shape_cast %10 : vector<1x16x64xf32> to vector<16x64xf32>
    %12 = vector.shape_cast %9 : vector<16x64xf32> to vector<1x16x64xf32>
    tpu.vector_store %arg4[%c0_8, %c0_9, %c0_10], %12 {strides = array<i32>} : memref<1x16x64xf32, #tpu.memory_space<vmem>>, vector<1x16x64xf32>,
    return
  }
  func.func @transform_0(%arg0: i32, %arg1: i32) -> (i32, i32) {
    %c0_i32 = arith.constant 0 : i32
    %c0_i32_0 = arith.constant 0 : i32
    %c0_i32_1 = arith.constant 0 : i32
    return %c0_i32, %c0_i32_0 : i32, i32
  }
  func.func @transform_1(%arg0: i32, %arg1: i32) -> (i32, i32, i32, i32) {
    %c0_i32 = arith.constant 0 : i32
    %c0_i32_0 = arith.constant 0 : i32
    %c0_i32_1 = arith.constant 0 : i32
    return %c0_i32, %arg0, %c0_i32_0, %arg1 : i32, i32, i32, i32
  }
  func.func @transform_2(%arg0: i32, %arg1: i32) -> (i32, i32, i32) {
    %c0_i32 = arith.constant 0 : i32
    %c0_i32_0 = arith.constant 0 : i32
    return %arg0, %c0_i32, %arg1 : i32, i32, i32
  }
}

</mosaic_0001>

<bundles_post_ra>
// kernel: a_call__.4
= control target key start
LH: loop header
LB: loop body
LE: loop exit
PB: predicated region body
PF: predicated region fallthrough
CT: control target
= control target key end

     0   :  { %s440_s9 = smov 0   ;;  %s442_s10 = smov 0   ;;  %s476_s0 = inlined_call_operand.vmem [shape: f32[16,16], index: 0, kind: input, shape index: {}]   ;;  %s477_s1 = inlined_call_operand.vmem [shape: f32[8,16,64], index: 1, kind: input, shape index: {}]   ;;  %s478_s2 = inlined_call_operand.vmem [shape: f32[8,16,64], index: 2, kind: output, shape index: {}]  }
   0x1   :  { %s444_s11 = smov 0  }
   0x2 LB: > { %s24_s12 = sadd.s32 1, %s419_s10  ;;  %p351_p0 = scmp.ge.s32.totalorder %s423_s11, 1  ;;  %s423_s11 = sphi %s444_s11, %s12_s11   ;;  %s419_s10 = sphi %s442_s10, %s480_s10   ;;  %s415_s9 = sphi %s440_s9, %s479_s9  }
   0x3   : > { %p26_p1 = scmp.ge.s32.totalorder %s24_s12, 8  ;;  %p131_p2 = scmp.lt.s32.totalorder %s423_s11, 9 }
   0x5   : > { %s482_s12 = smov (%p26_p1, %s24_s12), 0  ;;  %p132_p3 = pnand %p351_p0, %p131_p2 }
   0x6   : > { %p159_p4 = scmp.lt.s32.totalorder (!%p132_p3), %s415_s9, 7  ;;  %v175_v0 = vld [vmem:[%s476_s0] sm:$0xff] (!%p132_p3)  ;;  %vm179_vm0 = vcmask (!%p132_p3), 130048   ;;  %v176_v4 = vld [vmem:[%s476_s0 + $0x8] sm:$0xff] (!%p132_p3)  ;;  %vm261_vm1 = vcmask (!%p132_p3), 523264  }
   0x7   : > { %135 = sbr.rel (%p132_p3) target bundleno = 238 (0xee), region = 28  ;;  %370 = vmatprep.mubr.msk.f32.mxu0 (!%p132_p3), %vm179_vm0, %v175_v0 }
   0xe   : > { %s484_s9 = smov (!%p159_p4, %s415_s9), 7 }
   0xf   : > { %s360_s15 = sshll.u32 %s484_s9, 4 }
  0x10   : > { %s166_s18 = scalar_lea.vmem %s477_s1, %s360_s15  ;;  %s174_s23 = scalar_lea.vmem %s478_s2, %s360_s15 }
  0x11   : > { %v177_v1 = vld [vmem:[%s166_s18] sm:$0xff]  ;;  %v178_v2 = vld [vmem:[%s166_s18 + $0x8] sm:$0xff] }
  0x12   : > { %v373_v3 = vpack.c.bf16 %v178_v2, %v177_v1 }
  0x14   : > { %374 = vmatprep.subr.bf16.mxu0 %v373_v3 }
  0x15   : > { %376 = vmatpush3.bf16.msra.mxu0 %v373_v3 }
  0x18   : > { %371 = vmatmul.mubr.msk.f32.vlgmr.msra.gmra.mrb[0].mxu0 %vm179_vm0, %v176_v4 }
  0xeb   : > { %v372_v5 = vpop.f32.mrb[0].mxu0 }
  0xec   : > { %263 = vst.msk [vmem:[%s174_s23 + $0x8] sm:$0xff] %vm261_vm1, %v372_v5  ;;  %v252_v6 = vpop.f32.mrb[1].mxu0 }
  0xed   : > { %262 = vst.msk [vmem:[%s174_s23] sm:$0xff] %vm261_vm1, %v252_v6 }
  0xee PF: > { %s12_s11 = sadd.s32 1, %s423_s11   ;;  %s479_s9 = smov %s419_s10 }
  0xef   : > { %p9_p5 = scmp.ge.s32.totalorder %s12_s11, 10   ;;  %s480_s10 = smov %s482_s12 }
  0xf1   :  { %11 = sbr.rel (!%p9_p5) target bundleno = 2 (0x2), region = 58 }

// kernel: a_call__.3
= control target key start
LH: loop header
LB: loop body
LE: loop exit
PB: predicated region body
PF: predicated region fallthrough
CT: control target
= control target key end

     0   :  { %s1287_s0 = inlined_call_operand.vmem [shape: f32[4,16,64], index: 0, kind: input, shape index: {}]   ;;  %s1288_s1 = inlined_call_operand.vmem [shape: f32[2,19], index: 1, kind: input, shape index: {}]   ;;  %s1289_s2 = inlined_call_operand.vmem [shape: f32[2,4,16,64], index: 2, kind: output, shape index: {}]  }
   0x1   :  { %1294 = sst [smem:[#allocation12_spill]] %s1287_s0 }
   0x2   :  { %1295 = sst [smem:[#allocation13_spill]] %s1288_s1 }
   0x3   :  { %7 = vsyncpa [#allocation4], 0  ;;  %s889_s9 = smov 0   ;;  %s891_s10 = smov 0  }
   0x4   :  { %s893_s11 = smov 0   ;;  %s895_s12 = smov 0  }
   0x5   :  { %s897_s13 = smov 0  }
   0x6 LB: > { %1296 = sst [smem:[#allocation7_spill]] %s858_s10  ;;  %s668_s14 = sadd.s32 4294967295, %s870_s13   ;;  %s870_s13 = sphi %s897_s13, %s13_s13   ;;  %s866_s12 = sphi %s895_s12, %s1310_s12   ;;  %s862_s11 = sphi %s893_s11, %s1309_s11   ;;  %s858_s10 = sphi %s891_s10, %s1308_s10   ;;  %s854_s9 = sphi %s889_s9, %s1307_s9  }
   0x7   : > { %1297 = sst [smem:[#allocation8_spill]] %s866_s12  ;;  %s25_s15 = sadd.s32 1, %s866_s12 }
   0x8   : > { %1298 = sst [smem:[#allocation9_spill]] %s870_s13  ;;  %p27_p0 = scmp.ge.s32.totalorder %s25_s15, 4 }
   0x9   : > { %s83_s16 = sadd.s32 1, %s858_s10  ;;  %p93_p1 = scmp.ne.s32.totalorder %s858_s10, %s854_s9 }
   0xa   : > { %p94_p2 = scmp.eq.s32.totalorder %s668_s14, 3  ;;  %s1312_s15 = smov (%p27_p0, %s25_s15), 0 }
   0xb   : > { %1299 = sst [smem:[#allocation10_spill]] %s1312_s15  ;;  %p670_p4 = scmp.ge.s32.totalorder %s870_s13, 1 }
   0xc   : > { %p921_p3 = por %p94_p2, %p93_p1  ;;  %s78_s18 = ssub.s32 %s866_s12, %s1312_s15 }
   0xd   : > { %p107_p5 = scmp.lt.s32.totalorder %s870_s13, 5  ;;  %p81_p6 = scmp.eq.s32.totalorder %s78_s18, 0 }
   0xe   : > { %p933_p8 = scmp.eq.s32.totalorder %s668_s14, 0  ;;  %s1304_s1 = sld [smem:[#allocation13_spill]] }
   0xf   : > { %p929_p7 = pnand %p670_p4, %p107_p5 }
  0x10   : > { %s938_s21 = scalar_select %p81_p6, %s858_s10, %s83_s16  }
  0x11   : > { %p765_p9 = pneg %p929_p7 }
  0x12   : > { %1303 = sst [smem:[#allocation11_spill]] %s938_s21 }
  0x13   : > { %p766_p10 = pnand %p933_p8, %p765_p9 }
  0x14   : > { %s120_s24 = sshll.u32 %s1304_s1, 4  ;;  %s121_s24 = int_to_ptr.vmem [resolvable:$true] %s120_s24 }
  0x15   : > { %s813_s25 = scalar_lea.vmem %s121_s24, 32  ;;  %p815_p12 = pneg %p766_p10 }
  0x16   : > { %p814_p11 = scmp.ne.s32.totalorder %s121_s24, %s813_s25  ;;  %p821_p1 = scmp.lt.s32.totalorder %s121_s24, %s121_s24 }
  0x17   : > { %p822_p2 = scmp.lt.s32.totalorder %s813_s25, %s813_s25 }
  0x18   : > { %p816_p13 = pnand %p815_p12, %p814_p11 }
  0x19   : > { %p823_p4 = por %p822_p2, %p821_p1 }
  0x1a   : > { %p817_p0 = pneg %p816_p13 }
  0x1c   : > { %p824_p5 = pnand %p823_p4, %p817_p0 }
  0x1e   : > { %827 = shalt.err (!%p824_p5)
}
  0x1f   : > { %s872_s26 = smov [#allocation3]   ;;  %144 = sbr.rel (%p929_p7) target bundleno = 124 (0x7c), region = 28 }
  0x20   : > { %768 = dma.vmem_to_smem (!%p766_p10), %s121_s24, 32, %s872_s26, [#allocation4]  }
  0x26   : > { %849 = dma.done.wait (%p933_p8), [#allocation4], 32  }
  0x27   : > { %851 = vsyncadd (%p933_p8), [#allocation4], 4294967264 }
  0x28   : > { %150 = sfence }
  0x29   : > { %vm177_vm0 = vcmask 523264   ;;  %s953_s27 = sld [smem:[#allocation3]]  ;;  %v873_v0 = vmov 0.0   ;;  %vm179_vm1 = vcmask 516096   ;;  %s957_s28 = sld [smem:[#allocation3 + $0x1]] }
  0x2a   : > { %178 = vst.msk [vmem:[#allocation2] sm:$0xff] %vm177_vm0, %v873_v0  ;;  %181 = vst.msk [vmem:[#allocation2 + $0x19] sm:$0xff] %vm177_vm0, %v873_v0  ;;  %p169_p6 = scmp.lt.s32.totalorder %s862_s11, 3  ;;  %s961_s30 = sld [smem:[#allocation3 + $0x80]] }
  0x2b   : > { %180 = vst.msk [vmem:[#allocation2 + $0x8] sm:$0x1] %vm179_vm1, %v873_v0  ;;  %182 = vst.msk [vmem:[#allocation2 + $0x21] sm:$0x1] %vm179_vm1, %v873_v0  ;;  %s963_s3 = sld [smem:[#allocation3 + $0x81]]  ;;  %s965_s5 = sld [smem:[#allocation3 + $0x2]] }
  0x2c   : > { %s170_s29 = scalar_select %p169_p6, %s862_s11, 3 }
  0x2d   : > { %s1305_s0 = sld [smem:[#allocation12_spill]]  ;;  %s973_s14 = sld [smem:[#allocation3 + $0x3]] }
  0x2e   : > { %s759_s4 = sshll.u32 %s170_s29, 4  ;;  %s976_s16 = sld [smem:[#allocation3 + $0x82]] }
  0x2f   : > { %v189_v2 = vstv %s953_s27  ;;  %v198_v3 = vstv %s957_s28  ;;  %s978_s18 = sld [smem:[#allocation3 + $0x4]]  ;;  %s980_s19 = sld [smem:[#allocation3 + $0x5]] }
  0x30   : > { %v193_v9 = vstv %s961_s30  ;;  %s985_s20 = sld [smem:[#allocation3 + $0x83]]  ;;  %s987_s22 = sld [smem:[#allocation3 + $0x84]] }
  0x31   : > { %v187_v1 = vld [vmem:[#allocation2] sm:$0xff]  ;;  %v202_v10 = vstv %s963_s3  ;;  %v207_v11 = vstv %s965_s5  ;;  %s989_s23 = sld [smem:[#allocation3 + $0x6]]  ;;  %s992_s24 = sld [smem:[#allocation3 + $0x7]] }
  0x32   : > { %v196_v6 = vld [vmem:[#allocation2 + $0x1] sm:$0xff]  ;;  %v190_v7 = vmul.f32 %v189_v2, %v187_v1  ;;  %v194_v14 = vmul.f32 %v193_v9, %v187_v1  ;;  %s995_s25 = sld [smem:[#allocation3 + $0x8]]  ;;  %s998_s26 = sld [smem:[#allocation3 + $0x9]] }
  0x33   : > { %s176_s8 = scalar_lea.vmem %s1305_s0, %s759_s4  ;;  %v199_v8 = vmul.f32 %v198_v3, %v196_v6  ;;  %v203_v15 = vmul.f32 %v202_v10, %v196_v6  ;;  %v216_v18 = vstv %s973_s14  ;;  %s1005_s27 = sld [smem:[#allocation3 + $0x85]] }
  0x34   : > { %v183_v4 = vld [vmem:[%s176_s8] sm:$0xff]  ;;  %v184_v5 = vld [vmem:[%s176_s8 + $0x8] sm:$0xff]  ;;  %v211_v19 = vstv %s976_s16  ;;  %s1007_s28 = sld [smem:[#allocation3 + $0x86]]  ;;  %s1012_s29 = sld [smem:[#allocation3 + $0xa]] }
  0x35   : > { %185 = vst.msk [vmem:[#allocation2 + $0x9] sm:$0xff] %vm177_vm0, %v183_v4  ;;  %186 = vst.msk [vmem:[#allocation2 + $0x11] sm:$0xff] %vm177_vm0, %v184_v5  ;;  %v200_v12 = vadd.f32 %v199_v8, %v190_v7  ;;  %v225_v22 = vstv %s978_s18  ;;  %v204_v24 = vadd.f32 %v203_v15, %v194_v14  ;;  %v234_v29 = vstv %s980_s19  ;;  %s1022_s30 = sld [smem:[#allocation3 + $0x87]]  ;;  %s1027_s3 = sld [smem:[#allocation3 + $0xb]] }
  0x36   : > { %v220_v32 = vstv %s985_s20  ;;  %v229_v33 = vstv %s987_s22  ;;  %s1029_s4 = sld [smem:[#allocation3 + $0xc]]  ;;  %s1034_s5 = sld [smem:[#allocation3 + $0xd]] }
  0x37   : > { %v243_v35 = vstv %s989_s23  ;;  %v252_v46 = vstv %s992_s24  ;;  %s1036_s6 = sld [smem:[#allocation3 + $0x88]]  ;;  %s1045_s7 = sld [smem:[#allocation3 + $0xe]] }
  0x38   : > { %v261_v50 = vstv %s995_s25  ;;  %s1052_s8 = sld [smem:[#allocation3 + $0x89]]  ;;  %v270_v61 = vstv %s998_s26  ;;  %s1055_s14 = sld [smem:[#allocation3 + $0xf]] }
  0x39   : > { %v238_v63 = vstv %s1005_s27  ;;  %s1062_s16 = sld [smem:[#allocation3 + $0x10]]  ;;  %s1065_s18 = sld [smem:[#allocation3 + $0x8a]] }
  0x3a   : > { %v279_v5 = vstv %s1012_s29  ;;  %s1071_s20 = sld [smem:[#allocation3 + $0x11]]  ;;  %s1078_s22 = sld [smem:[#allocation3 + $0x12]] }
  0x3b   : > { %s1081_s0 = sld [smem:[#allocation3 + $0x8b]]  ;;  %s1094_s1 = sld [smem:[#allocation3 + $0x8c]] }
  0x3c   : > { %v205_v13 = vld [vmem:[#allocation2 + $0x2] sm:$0xff]  ;;  %v1016_v38 = vld [vmem:[#allocation2 + $0xa] sm:$0xff]  ;;  %s1108_s15 = sld [smem:[#allocation3 + $0x8d]]  ;;  %s1124_s12 = sld [smem:[#allocation3 + $0x8e]] }
  0x3d   : > { %v208_v16 = vmul.f32 %v207_v11, %v205_v13  ;;  %v214_v17 = vld [vmem:[#allocation2 + $0x3] sm:$0xff]  ;;  %v212_v25 = vmul.f32 %v211_v19, %v205_v13  ;;  %v1018_v39 = vld [vmem:[#allocation2 + $0xb] sm:$0xff]  ;;  %v382_v52 = vmul.f32 %v1016_v38, %v207_v11  ;;  %v386_v53 = vmul.f32 %v1016_v38, %v211_v19  ;;  %s1140_s21 = sld [smem:[#allocation3 + $0x8f]]  ;;  %s1157_s10 = sld [smem:[#allocation3 + $0x90]] }
  0x3e   : > { %v223_v21 = vld [vmem:[#allocation2 + $0x4] sm:$0xff]  ;;  %v217_v23 = vmul.f32 %v216_v18, %v214_v17  ;;  %v221_v47 = vmul.f32 %v220_v32, %v214_v17  ;;  %v1041_v54 = vmul.f32 %v1018_v39, %v216_v18  ;;  %v1043_v55 = vld [vmem:[#allocation2 + $0xc] sm:$0xff]  ;;  %v1048_v57 = vmul.f32 %v1018_v39, %v220_v32  ;;  %s1169_s19 = sld [smem:[#allocation3 + $0x91]]  ;;  %s166_s13 = sand.u32 1, %s854_s9  }
  0x3f   : > { %v209_v20 = vadd.f32 %v208_v16, %v200_v12  ;;  %v232_v26 = vld [vmem:[#allocation2 + $0x5] sm:$0xff]  ;;  %v226_v30 = vmul.f32 %v225_v22, %v223_v21  ;;  %v213_v42 = vadd.f32 %v212_v25, %v204_v24  ;;  %v230_v51 = vmul.f32 %v229_v33, %v223_v21  ;;  %v1087_v16 = vld [vmem:[#allocation2 + $0xd] sm:$0xff]  ;;  %s1180_s23 = sld [smem:[#allocation3 + $0x92]]  ;;  %s675_s9 = sshll.u32 %s166_s13, 5 }
  0x40   : > { %v1000_v27 = vld [vmem:[#allocation2 + $0x8] sm:$0xff]  ;;  %v235_v41 = vmul.f32 %v234_v29, %v232_v26  ;;  %v400_v0 = vmul.f32 %v1043_v55, %v225_v22  ;;  %v1068_v4 = vmul.f32 %v1043_v55, %v229_v33  ;;  %v239_v7 = vmul.f32 %v238_v63, %v232_v26 }
  0x41   : > { %v1002_v28 = vld [vmem:[#allocation2 + $0x9] sm:$0xff]  ;;  %v218_v31 = vadd.f32 %v217_v23, %v209_v20  ;;  %v364_v36 = vmul.f32 %v1000_v27, %v189_v2  ;;  %v368_v43 = vmul.f32 %v1000_v27, %v193_v9  ;;  %v222_v62 = vadd.f32 %v221_v47, %v213_v42  ;;  %v1128_v47 = vld [vmem:[#allocation2 + $0x11] sm:$0xff] }
  0x42   : > { %v241_v34 = vld [vmem:[#allocation2 + $0x6] sm:$0xff]  ;;  %v373_v37 = vmul.f32 %v1002_v28, %v198_v3  ;;  %v377_v44 = vmul.f32 %v1002_v28, %v202_v10  ;;  %v262_v2 = vmul.f32 %v1000_v27, %v261_v50  ;;  %v247_v3 = vstv %s1007_s28  ;;  %v1096_v22 = vld [vmem:[#allocation2 + $0xe] sm:$0xff] }
  0x43   : > { %v227_v40 = vadd.f32 %v226_v30, %v218_v31  ;;  %v250_v45 = vld [vmem:[#allocation2 + $0x7] sm:$0xff]  ;;  %v244_v49 = vmul.f32 %v243_v35, %v241_v34  ;;  %v231_v6 = vadd.f32 %v230_v51, %v222_v62  ;;  %v271_v10 = vmul.f32 %v1002_v28, %v270_v61 }
  0x44   : > { %v374_v56 = vadd.f32 %v373_v37, %v364_v36  ;;  %v253_v59 = vmul.f32 %v252_v46, %v250_v45  ;;  %v378_v60 = vadd.f32 %v377_v44, %v368_v43  ;;  %v256_v11 = vstv %s1022_s30 }
  0x45   : > { %v236_v48 = vadd.f32 %v235_v41, %v227_v40  ;;  %v288_v12 = vstv %s1027_s3  ;;  %v297_v13 = vstv %s1029_s4  ;;  %v240_v14 = vadd.f32 %v239_v7, %v231_v6 }
  0x46   : > { %v383_v8 = vadd.f32 %v382_v52, %v374_v56  ;;  %v248_v15 = vmul.f32 %v247_v3, %v241_v34  ;;  %v280_v18 = vmul.f32 %v1016_v38, %v279_v5  ;;  %v306_v19 = vstv %s1034_s5  ;;  %v1113_v34 = vld [vmem:[#allocation2 + $0xf] sm:$0xff] }
  0x47   : > { %v245_v58 = vadd.f32 %v244_v49, %v236_v48  ;;  %v265_v20 = vstv %s1036_s6  ;;  %v387_v21 = vadd.f32 %v386_v53, %v378_v60  ;;  %v315_v23 = vstv %s1045_s7 }
  0x48   : > { %v249_v24 = vadd.f32 %v248_v15, %v240_v14  ;;  %v257_v25 = vmul.f32 %v256_v11, %v250_v45  ;;  %v289_v30 = vmul.f32 %v1018_v39, %v288_v12  ;;  %v298_v31 = vmul.f32 %v1043_v55, %v297_v13  ;;  %v1126_v45 = vld [vmem:[#allocation2 + $0x10] sm:$0xff] }
  0x49   : > { %v254_v1 = vadd.f32 %v253_v59, %v245_v58  ;;  %v274_v32 = vstv %s1052_s8  ;;  %v307_v33 = vmul.f32 %v1087_v16, %v306_v19  ;;  %v324_v36 = vstv %s1055_s14  ;;  %v1142_v59 = vld [vmem:[#allocation2 + $0x12] sm:$0xff] }
  0x4a   : > { %v258_v37 = vadd.f32 %v257_v25, %v249_v24  ;;  %v266_v40 = vmul.f32 %v1000_v27, %v265_v20  ;;  %v316_v42 = vmul.f32 %v315_v23, %v1096_v22  ;;  %v333_v43 = vstv %s1062_s16 }
  0x4b   : > { %v263_v9 = vadd.f32 %v262_v2, %v254_v1  ;;  %v283_v44 = vstv %s1065_s18  ;;  %v342_v48 = vstv %s1071_s20  ;;  %v275_v27 = vmul.f32 %v1002_v28, %v274_v32 }
  0x4c   : > { %v267_v49 = vadd.f32 %v266_v40, %v258_v37  ;;  %v392_v51 = vadd.f32 %v1041_v54, %v383_v8  ;;  %v325_v53 = vmul.f32 %v324_v36, %v1113_v34  ;;  %v351_v56 = vstv %s1078_s22 }
  0x4d   : > { %v272_v17 = vadd.f32 %v271_v10, %v263_v9  ;;  %v292_v58 = vstv %s1081_s0  ;;  %v284_v28 = vmul.f32 %v1016_v38, %v283_v44  ;;  %v409_v54 = vmul.f32 %v1087_v16, %v234_v29  ;;  %s760_s0 = sshll.u32 (%p921_p3), %s862_s11, 4 }
  0x4e   : > { %v276_v60 = vadd.f32 %v275_v27, %v267_v49  ;;  %v401_v62 = vadd.f32 %v400_v0, %v392_v51  ;;  %v334_v2 = vmul.f32 %v333_v43, %v1126_v45  ;;  %v343_v6 = vmul.f32 %v342_v48, %v1128_v47  ;;  %v460_v49 = vld [vmem:[#allocation2 + $0x13] sm:$0xff]  ;;  %s544_s13 = scalar_lea.vmem (%p921_p3), %s1289_s2, %s760_s0 }
  0x4f   : > { %v281_v26 = vadd.f32 %v280_v18, %v272_v17  ;;  %v301_v7 = vstv %s1094_s1  ;;  %v293_v38 = vmul.f32 %v1018_v39, %v292_v58  ;;  %v418_v29 = vmul.f32 %v1096_v22, %v243_v35 }
  0x50   : > { %v285_v8 = vadd.f32 %v284_v28, %v276_v60  ;;  %v410_v0 = vadd.f32 %v409_v54, %v401_v62  ;;  %v352_v10 = vmul.f32 %v351_v56, %v1142_v59  ;;  %v310_v14 = vstv %s1108_s15  ;;  %v469_v28 = vld [vmem:[#allocation2 + $0x14] sm:$0xff] }
  0x51   : > { %v290_v41 = vadd.f32 %v289_v30, %v281_v26  ;;  %v396_v15 = vadd.f32 %v1048_v57, %v387_v21  ;;  %v302_v39 = vmul.f32 %v1043_v55, %v301_v7  ;;  %v427_v35 = vmul.f32 %v1113_v34, %v252_v46 }
  0x52   : > { %v294_v17 = vadd.f32 %v293_v38, %v285_v8  ;;  %v419_v18 = vadd.f32 %v418_v29, %v410_v0  ;;  %v319_v25 = vstv %s1124_s12  ;;  %v413_v57 = vmul.f32 %v1087_v16, %v238_v63  ;;  %v487_v29 = vld [vmem:[#allocation2 + $0x16] sm:$0xff] }
  0x53   : > { %v299_v52 = vadd.f32 %v298_v31, %v290_v41  ;;  %v405_v26 = vadd.f32 %v1068_v4, %v396_v15  ;;  %v311_v55 = vmul.f32 %v1087_v16, %v310_v14  ;;  %v436_v46 = vmul.f32 %v1126_v45, %v261_v50 }
  0x54   : > { %v303_v21 = vadd.f32 %v302_v39, %v294_v17  ;;  %v428_v30 = vadd.f32 %v427_v35, %v419_v18  ;;  %v422_v4 = vmul.f32 %v1096_v22, %v247_v3  ;;  %v320_v40 = vmul.f32 %v319_v25, %v1096_v22  ;;  %v496_v18 = vld [vmem:[#allocation2 + $0x17] sm:$0xff] }
  0x55   : > { %v308_v1 = vadd.f32 %v307_v33, %v299_v52  ;;  %v328_v33 = vstv %s1140_s21  ;;  %v414_v37 = vadd.f32 %v413_v57, %v405_v26  ;;  %v445_v41 = vmul.f32 %v1128_v47, %v270_v61 }
  0x56   : > { %v312_v63 = vadd.f32 %v311_v55, %v303_v21  ;;  %v437_v16 = vadd.f32 %v436_v46, %v428_v30  ;;  %v431_v51 = vmul.f32 %v1113_v34, %v256_v11  ;;  %v329_v3 = vmul.f32 %v328_v33, %v1113_v34  ;;  %v514_v55 = vld [vmem:[#allocation2 + $0x19] sm:$0xff] }
  0x57   : > { %v317_v9 = vadd.f32 %v316_v42, %v308_v1  ;;  %v337_v42 = vstv %s1157_s10  ;;  %v423_v27 = vadd.f32 %v422_v4, %v414_v37  ;;  %v454_v22 = vmul.f32 %v1142_v59, %v279_v5  ;;  %s1219_s10 = scalar_lea.vmem [#allocation5], %s675_s9 }
  0x58   : > { %v321_v52 = vadd.f32 %v320_v40, %v312_v63  ;;  %v346_v61 = vstv %s1169_s19  ;;  %v440_v54 = vmul.f32 %v1126_v45, %v265_v20  ;;  %v338_v11 = vmul.f32 %v337_v42, %v1126_v45 }
  0x59   : > { %v326_v24 = vadd.f32 %v325_v53, %v317_v9  ;;  %v446_v53 = vadd.f32 %v445_v41, %v437_v16  ;;  %v432_v62 = vadd.f32 %v431_v51, %v423_v27  ;;  %v463_v34 = vmul.f32 %v460_v49, %v288_v12 }
  0x5a   : > { %v330_v1 = vadd.f32 %v329_v3, %v321_v52  ;;  %v355_v5 = vstv %s1180_s23  ;;  %v449_v20 = vmul.f32 %v1128_v47, %v274_v32  ;;  %v347_v45 = vmul.f32 %v346_v61, %v1128_v47 }
  0x5b   : > { %v335_v31 = vadd.f32 %v334_v2, %v326_v24  ;;  %v455_v2 = vadd.f32 %v454_v22, %v446_v53  ;;  %v441_v8 = vadd.f32 %v440_v54, %v432_v62  ;;  %v472_v12 = vmul.f32 %v469_v28, %v297_v13 }
  0x5c   : > { %v339_v38 = vadd.f32 %v338_v11, %v330_v1  ;;  %v356_v17 = vmul.f32 %v355_v5, %v1142_v59  ;;  %v467_v13 = vmul.f32 %v460_v49, %v292_v58  ;;  %v490_v26 = vmul.f32 %v487_v29, %v315_v23 }
  0x5d   : > { %v344_v50 = vadd.f32 %v343_v6, %v335_v31  ;;  %v478_v6 = vld [vmem:[#allocation2 + $0x15] sm:$0xff]  ;;  %v464_v0 = vadd.f32 %v463_v34, %v455_v2  ;;  %v450_v9 = vadd.f32 %v449_v20, %v441_v8  ;;  %v499_v21 = vmul.f32 %v496_v18, %v324_v36 }
  0x5e   : > { %v348_v15 = vadd.f32 %v347_v45, %v339_v38  ;;  %v481_v32 = vmul.f32 %v478_v6, %v306_v19  ;;  %v485_v58 = vmul.f32 %v478_v6, %v310_v14  ;;  %v523_v31 = vld [vmem:[#allocation2 + $0x1a] sm:$0xff]  ;;  %v494_v4 = vmul.f32 %v487_v29, %v319_v25 }
  0x5f   : > { %v353_v60 = vadd.f32 %v352_v10, %v344_v50  ;;  %v458_v10 = vmul.f32 %v1142_v59, %v283_v44  ;;  %v473_v39 = vadd.f32 %v472_v12, %v464_v0  ;;  %v505_v44 = vld [vmem:[#allocation2 + $0x18] sm:$0xff]  ;;  %v476_v59 = vmul.f32 %v469_v28, %v301_v7 }
  0x60   : > { %v357_v35 = vadd.f32 %v356_v17, %v348_v15  ;;  %v508_v23 = vmul.f32 %v505_v44, %v333_v43  ;;  %v517_v63 = vmul.f32 %v514_v55, %v342_v48  ;;  %v503_v16 = vmul.f32 %v496_v18, %v328_v33 }
  0x61   : > { %358 = vst.msk [vmem:[%s1219_s10] sm:$0xff] %vm177_vm0, %v353_v60  ;;  %v459_v47 = vadd.f32 %v458_v10, %v450_v9  ;;  %v482_v24 = vadd.f32 %v481_v32, %v473_v39  ;;  %v526_v41 = vmul.f32 %v523_v31, %v351_v56  ;;  %v512_v14 = vmul.f32 %v505_v44, %v337_v42 }
  0x62   : > { %715 = vst.msk [vmem:[%s1219_s10 + $0x10] sm:$0xff] %vm177_vm0, %v357_v35  ;;  %v521_v51 = vmul.f32 %v514_v55, %v346_v61  ;;  %v530_v52 = vmul.f32 %v523_v31, %v355_v5 }
  0x63   : > { %v468_v57 = vadd.f32 %v467_v13, %v459_v47  ;;  %v491_v19 = vadd.f32 %v490_v26, %v482_v24 }
  0x65   : > { %v477_v30 = vadd.f32 %v476_v59, %v468_v57  ;;  %v500_v46 = vadd.f32 %v499_v21, %v491_v19 }
  0x67   : > { %v486_v37 = vadd.f32 %v485_v58, %v477_v30  ;;  %v509_v7 = vadd.f32 %v508_v23, %v500_v46 }
  0x68   : > { %v578_v48 = vld [vmem:[%s1219_s10] sm:$0xff] (%p921_p3) }
  0x69   : > { %v495_v40 = vadd.f32 %v494_v4, %v486_v37  ;;  %v518_v36 = vadd.f32 %v517_v63, %v509_v7  ;;  %v582_v33 = vld [vmem:[%s1219_s10 + $0x10] sm:$0xff] (%p921_p3)  ;;  %579 = vst [vmem:[%s544_s13] sm:$0xff] (%p921_p3), %v578_v48 }
  0x6a   : > { %583 = vst [vmem:[%s544_s13 + $0x40] sm:$0xff] (%p921_p3), %v582_v33 }
  0x6b   : > { %v504_v50 = vadd.f32 %v503_v16, %v495_v40  ;;  %v527_v49 = vadd.f32 %v526_v41, %v518_v36 }
  0x6d   : > { %v513_v27 = vadd.f32 %v512_v14, %v504_v50  ;;  %532 = vst.msk [vmem:[%s1219_s10 + $0x8] sm:$0xff] %vm177_vm0, %v527_v49  ;;  %540 = sbr.rel (!%p921_p3) target bundleno = 124 (0x7c), region = 36 }
  0x6f   : > { %v522_v43 = vadd.f32 %v521_v51, %v513_v27 }
  0x71   : > { %v531_v25 = vadd.f32 %v530_v52, %v522_v43 }
  0x73   : > { %753 = vst.msk [vmem:[%s1219_s10 + $0x18] sm:$0xff] %vm177_vm0, %v531_v25 }
  0x74   : > { %v580_v56 = vld [vmem:[%s1219_s10 + $0x8] sm:$0xff] }
  0x75   : > { %581 = vst [vmem:[%s544_s13 + $0x8] sm:$0xff] %v580_v56 }
  0x7a   : > { %v584_v42 = vld [vmem:[%s1219_s10 + $0x18] sm:$0xff] }
  0x7b   : > { %585 = vst [vmem:[%s544_s13 + $0x48] sm:$0xff] %v584_v42 }
  0x7c PF: > { %s1306_s15 = sld [smem:[#allocation9_spill]]  ;;  %s1307_s9 = sld [smem:[#allocation7_spill]] }
  0x7d   : > { %s1308_s10 = sld [smem:[#allocation11_spill]]  ;;  %s1309_s11 = sld [smem:[#allocation8_spill]] }
  0x7e   : > { %s1310_s12 = sld [smem:[#allocation10_spill]] }
  0x82   : > { %s13_s13 = sadd.s32 1, %s1306_s15  }
  0x83   : > { %p10_p3 = scmp.ge.s32.totalorder %s13_s13, 6  }
  0x85   :  { %12 = sbr.rel (!%p10_p3) target bundleno = 6 (0x6), region = 102 }
  0x8c   :  { %601 = vsyncpa [#allocation4], 1 }
  0x8d   :  { %603 = vsyncpa [#allocation4 + $0x1], 1 }

// kernel: reverse.1
= control target key start
LH: loop header
LB: loop body
LE: loop exit
PB: predicated region body
PF: predicated region fallthrough
CT: control target
= control target key end

     0   :  { %s1352_s0 = inlined_call_operand.vmem [shape: f32[8,32,16,7], index: 0, kind: input, shape index: {}]   ;;  %s1353_s1 = inlined_call_operand.vmem [shape: f32[8,32,16,7], index: 1, kind: output, shape index: {}]  }
   0x1   :  { %v448_v0 = vld [vmem:[%s1352_s0 + $0x60] sm:$0xff]  ;;  %v449_v1 = vld [vmem:[%s1352_s0 + $0xd0] sm:$0xff]  ;;  %v558_v56 = vld [vmem:[%s1352_s0 + $0x68] sm:$0xff] }
   0x2   :  { %v451_v2 = vld [vmem:[%s1352_s0 + $0x140] sm:$0xff]  ;;  %4 = vst [vmem:[%s1353_s1] sm:$0xff] %v448_v0  ;;  %450 = vst [vmem:[%s1353_s1 + $0x70] sm:$0xff] %v449_v1  ;;  %v453_v3 = vld [vmem:[%s1352_s0 + $0x1b0] sm:$0xff] }
   0x3   :  { %452 = vst [vmem:[%s1353_s1 + $0xe0] sm:$0xff] %v451_v2  ;;  %v455_v4 = vld [vmem:[%s1352_s0 + $0x220] sm:$0xff]  ;;  %v457_v5 = vld [vmem:[%s1352_s0 + $0x290] sm:$0xff]  ;;  %454 = vst [vmem:[%s1353_s1 + $0x150] sm:$0xff] %v453_v3 }
   0x4   :  { %456 = vst [vmem:[%s1353_s1 + $0x1c0] sm:$0xff] %v455_v4  ;;  %458 = vst [vmem:[%s1353_s1 + $0x230] sm:$0xff] %v457_v5  ;;  %v459_v6 = vld [vmem:[%s1352_s0 + $0x300] sm:$0xff]  ;;  %v461_v7 = vld [vmem:[%s1352_s0 + $0x370] sm:$0xff] }
   0x5   :  { %v463_v8 = vld [vmem:[%s1352_s0 + $0x50] sm:$0xff]  ;;  %460 = vst [vmem:[%s1353_s1 + $0x2a0] sm:$0xff] %v459_v6  ;;  %462 = vst [vmem:[%s1353_s1 + $0x310] sm:$0xff] %v461_v7  ;;  %v465_v9 = vld [vmem:[%s1352_s0 + $0xc0] sm:$0xff] }
   0x6   :  { %464 = vst [vmem:[%s1353_s1 + $0x10] sm:$0xff] %v463_v8  ;;  %v467_v10 = vld [vmem:[%s1352_s0 + $0x130] sm:$0xff]  ;;  %v469_v11 = vld [vmem:[%s1352_s0 + $0x1a0] sm:$0xff]  ;;  %466 = vst [vmem:[%s1353_s1 + $0x80] sm:$0xff] %v465_v9 }
   0x7   :  { %468 = vst [vmem:[%s1353_s1 + $0xf0] sm:$0xff] %v467_v10  ;;  %470 = vst [vmem:[%s1353_s1 + $0x160] sm:$0xff] %v469_v11  ;;  %v471_v12 = vld [vmem:[%s1352_s0 + $0x210] sm:$0xff]  ;;  %v473_v13 = vld [vmem:[%s1352_s0 + $0x280] sm:$0xff] }
   0x8   :  { %v475_v14 = vld [vmem:[%s1352_s0 + $0x2f0] sm:$0xff]  ;;  %472 = vst [vmem:[%s1353_s1 + $0x1d0] sm:$0xff] %v471_v12  ;;  %474 = vst [vmem:[%s1353_s1 + $0x240] sm:$0xff] %v473_v13  ;;  %v477_v15 = vld [vmem:[%s1352_s0 + $0x360] sm:$0xff] }
   0x9   :  { %476 = vst [vmem:[%s1353_s1 + $0x2b0] sm:$0xff] %v475_v14  ;;  %v479_v16 = vld [vmem:[%s1352_s0 + $0x40] sm:$0xff]  ;;  %v481_v17 = vld [vmem:[%s1352_s0 + $0xb0] sm:$0xff]  ;;  %478 = vst [vmem:[%s1353_s1 + $0x320] sm:$0xff] %v477_v15 }
   0xa   :  { %480 = vst [vmem:[%s1353_s1 + $0x20] sm:$0xff] %v479_v16  ;;  %482 = vst [vmem:[%s1353_s1 + $0x90] sm:$0xff] %v481_v17  ;;  %v483_v18 = vld [vmem:[%s1352_s0 + $0x120] sm:$0xff]  ;;  %v485_v19 = vld [vmem:[%s1352_s0 + $0x190] sm:$0xff] }
   0xb   :  { %v487_v20 = vld [vmem:[%s1352_s0 + $0x200] sm:$0xff]  ;;  %484 = vst [vmem:[%s1353_s1 + $0x100] sm:$0xff] %v483_v18  ;;  %486 = vst [vmem:[%s1353_s1 + $0x170] sm:$0xff] %v485_v19  ;;  %v489_v21 = vld [vmem:[%s1352_s0 + $0x270] sm:$0xff] }
   0xc   :  { %488 = vst [vmem:[%s1353_s1 + $0x1e0] sm:$0xff] %v487_v20  ;;  %v491_v22 = vld [vmem:[%s1352_s0 + $0x2e0] sm:$0xff]  ;;  %v493_v23 = vld [vmem:[%s1352_s0 + $0x350] sm:$0xff]  ;;  %490 = vst [vmem:[%s1353_s1 + $0x250] sm:$0xff] %v489_v21 }
   0xd   :  { %492 = vst [vmem:[%s1353_s1 + $0x2c0] sm:$0xff] %v491_v22  ;;  %494 = vst [vmem:[%s1353_s1 + $0x330] sm:$0xff] %v493_v23  ;;  %v495_v24 = vld [vmem:[%s1352_s0 + $0x30] sm:$0xff]  ;;  %v497_v25 = vld [vmem:[%s1352_s0 + $0xa0] sm:$0xff] }
   0xe   :  { %v499_v26 = vld [vmem:[%s1352_s0 + $0x110] sm:$0xff]  ;;  %496 = vst [vmem:[%s1353_s1 + $0x30] sm:$0xff] %v495_v24  ;;  %498 = vst [vmem:[%s1353_s1 + $0xa0] sm:$0xff] %v497_v25  ;;  %v501_v27 = vld [vmem:[%s1352_s0 + $0x180] sm:$0xff] }
   0xf   :  { %500 = vst [vmem:[%s1353_s1 + $0x110] sm:$0xff] %v499_v26  ;;  %v503_v28 = vld [vmem:[%s1352_s0 + $0x1f0] sm:$0xff]  ;;  %v505_v29 = vld [vmem:[%s1352_s0 + $0x260] sm:$0xff]  ;;  %502 = vst [vmem:[%s1353_s1 + $0x180] sm:$0xff] %v501_v27 }
  0x10   :  { %504 = vst [vmem:[%s1353_s1 + $0x1f0] sm:$0xff] %v503_v28  ;;  %506 = vst [vmem:[%s1353_s1 + $0x260] sm:$0xff] %v505_v29  ;;  %v507_v30 = vld [vmem:[%s1352_s0 + $0x2d0] sm:$0xff]  ;;  %v509_v31 = vld [vmem:[%s1352_s0 + $0x340] sm:$0xff] }
  0x11   :  { %v511_v32 = vld [vmem:[%s1352_s0 + $0x20] sm:$0xff]  ;;  %508 = vst [vmem:[%s1353_s1 + $0x2d0] sm:$0xff] %v507_v30  ;;  %510 = vst [vmem:[%s1353_s1 + $0x340] sm:$0xff] %v509_v31  ;;  %v513_v33 = vld [vmem:[%s1352_s0 + $0x90] sm:$0xff] }
  0x12   :  { %512 = vst [vmem:[%s1353_s1 + $0x40] sm:$0xff] %v511_v32  ;;  %v515_v34 = vld [vmem:[%s1352_s0 + $0x100] sm:$0xff]  ;;  %v517_v35 = vld [vmem:[%s1352_s0 + $0x170] sm:$0xff]  ;;  %514 = vst [vmem:[%s1353_s1 + $0xb0] sm:$0xff] %v513_v33 }
  0x13   :  { %516 = vst [vmem:[%s1353_s1 + $0x120] sm:$0xff] %v515_v34  ;;  %518 = vst [vmem:[%s1353_s1 + $0x190] sm:$0xff] %v517_v35  ;;  %v519_v36 = vld [vmem:[%s1352_s0 + $0x1e0] sm:$0xff]  ;;  %v521_v37 = vld [vmem:[%s1352_s0 + $0x250] sm:$0xff] }
  0x14   :  { %v523_v38 = vld [vmem:[%s1352_s0 + $0x2c0] sm:$0xff]  ;;  %520 = vst [vmem:[%s1353_s1 + $0x200] sm:$0xff] %v519_v36  ;;  %522 = vst [vmem:[%s1353_s1 + $0x270] sm:$0xff] %v521_v37  ;;  %v525_v39 = vld [vmem:[%s1352_s0 + $0x330] sm:$0xff] }
  0x15   :  { %524 = vst [vmem:[%s1353_s1 + $0x2e0] sm:$0xff] %v523_v38  ;;  %v527_v40 = vld [vmem:[%s1352_s0 + $0x10] sm:$0xff]  ;;  %v529_v41 = vld [vmem:[%s1352_s0 + $0x80] sm:$0xff]  ;;  %526 = vst [vmem:[%s1353_s1 + $0x350] sm:$0xff] %v525_v39 }
  0x16   :  { %528 = vst [vmem:[%s1353_s1 + $0x50] sm:$0xff] %v527_v40  ;;  %530 = vst [vmem:[%s1353_s1 + $0xc0] sm:$0xff] %v529_v41  ;;  %v531_v42 = vld [vmem:[%s1352_s0 + $0xf0] sm:$0xff]  ;;  %v533_v43 = vld [vmem:[%s1352_s0 + $0x160] sm:$0xff] }
  0x17   :  { %v535_v44 = vld [vmem:[%s1352_s0 + $0x1d0] sm:$0xff]  ;;  %532 = vst [vmem:[%s1353_s1 + $0x130] sm:$0xff] %v531_v42  ;;  %534 = vst [vmem:[%s1353_s1 + $0x1a0] sm:$0xff] %v533_v43  ;;  %v537_v45 = vld [vmem:[%s1352_s0 + $0x240] sm:$0xff] }
  0x18   :  { %536 = vst [vmem:[%s1353_s1 + $0x210] sm:$0xff] %v535_v44  ;;  %v539_v46 = vld [vmem:[%s1352_s0 + $0x2b0] sm:$0xff]  ;;  %v541_v47 = vld [vmem:[%s1352_s0 + $0x320] sm:$0xff]  ;;  %538 = vst [vmem:[%s1353_s1 + $0x280] sm:$0xff] %v537_v45 }
  0x19   :  { %540 = vst [vmem:[%s1353_s1 + $0x2f0] sm:$0xff] %v539_v46  ;;  %542 = vst [vmem:[%s1353_s1 + $0x360] sm:$0xff] %v541_v47  ;;  %v193_v48 = vld [vmem:[%s1352_s0] sm:$0xff]  ;;  %v544_v49 = vld [vmem:[%s1352_s0 + $0x70] sm:$0xff] }
  0x1a   :  { %v546_v50 = vld [vmem:[%s1352_s0 + $0xe0] sm:$0xff]  ;;  %543 = vst [vmem:[%s1353_s1 + $0x60] sm:$0xff] %v193_v48  ;;  %545 = vst [vmem:[%s1353_s1 + $0xd0] sm:$0xff] %v544_v49  ;;  %v548_v51 = vld [vmem:[%s1352_s0 + $0x150] sm:$0xff] }
  0x1b   :  { %547 = vst [vmem:[%s1353_s1 + $0x140] sm:$0xff] %v546_v50  ;;  %v550_v52 = vld [vmem:[%s1352_s0 + $0x1c0] sm:$0xff]  ;;  %v552_v53 = vld [vmem:[%s1352_s0 + $0x230] sm:$0xff]  ;;  %549 = vst [vmem:[%s1353_s1 + $0x1b0] sm:$0xff] %v548_v51 }
  0x1c   :  { %551 = vst [vmem:[%s1353_s1 + $0x220] sm:$0xff] %v550_v52  ;;  %553 = vst [vmem:[%s1353_s1 + $0x290] sm:$0xff] %v552_v53  ;;  %v554_v54 = vld [vmem:[%s1352_s0 + $0x2a0] sm:$0xff]  ;;  %v556_v55 = vld [vmem:[%s1352_s0 + $0x310] sm:$0xff] }
  0x1d   :  { %555 = vst [vmem:[%s1353_s1 + $0x300] sm:$0xff] %v554_v54  ;;  %557 = vst [vmem:[%s1353_s1 + $0x370] sm:$0xff] %v556_v55  ;;  %v560_v57 = vld [vmem:[%s1352_s0 + $0xd8] sm:$0xff]  ;;  %v562_v58 = vld [vmem:[%s1352_s0 + $0x148] sm:$0xff] }
  0x1e   :  { %559 = vst [vmem:[%s1353_s1 + $0x8] sm:$0xff] %v558_v56  ;;  %v564_v59 = vld [vmem:[%s1352_s0 + $0x1b8] sm:$0xff]  ;;  %561 = vst [vmem:[%s1353_s1 + $0x78] sm:$0xff] %v560_v57  ;;  %v566_v60 = vld [vmem:[%s1352_s0 + $0x228] sm:$0xff] }
  0x1f   :  { %563 = vst [vmem:[%s1353_s1 + $0xe8] sm:$0xff] %v562_v58  ;;  %565 = vst [vmem:[%s1353_s1 + $0x158] sm:$0xff] %v564_v59  ;;  %v568_v61 = vld [vmem:[%s1352_s0 + $0x298] sm:$0xff]  ;;  %v570_v62 = vld [vmem:[%s1352_s0 + $0x308] sm:$0xff] }
  0x20   :  { %567 = vst [vmem:[%s1353_s1 + $0x1c8] sm:$0xff] %v566_v60  ;;  %569 = vst [vmem:[%s1353_s1 + $0x238] sm:$0xff] %v568_v61  ;;  %v572_v63 = vld [vmem:[%s1352_s0 + $0x378] sm:$0xff]  ;;  %v576_v1 = vld [vmem:[%s1352_s0 + $0xc8] sm:$0xff] }
  0x21   :  { %571 = vst [vmem:[%s1353_s1 + $0x2a8] sm:$0xff] %v570_v62  ;;  %v574_v0 = vld [vmem:[%s1352_s0 + $0x58] sm:$0xff]  ;;  %573 = vst [vmem:[%s1353_s1 + $0x318] sm:$0xff] %v572_v63  ;;  %v580_v3 = vld [vmem:[%s1352_s0 + $0x1a8] sm:$0xff] }
  0x22   :  { %575 = vst [vmem:[%s1353_s1 + $0x18] sm:$0xff] %v574_v0  ;;  %577 = vst [vmem:[%s1353_s1 + $0x88] sm:$0xff] %v576_v1  ;;  %v578_v2 = vld [vmem:[%s1352_s0 + $0x138] sm:$0xff]  ;;  %v584_v5 = vld [vmem:[%s1352_s0 + $0x288] sm:$0xff] }
  0x23   :  { %v582_v4 = vld [vmem:[%s1352_s0 + $0x218] sm:$0xff]  ;;  %579 = vst [vmem:[%s1353_s1 + $0xf8] sm:$0xff] %v578_v2  ;;  %581 = vst [vmem:[%s1353_s1 + $0x168] sm:$0xff] %v580_v3  ;;  %v588_v7 = vld [vmem:[%s1352_s0 + $0x368] sm:$0xff] }
  0x24   :  { %583 = vst [vmem:[%s1353_s1 + $0x1d8] sm:$0xff] %v582_v4  ;;  %v586_v6 = vld [vmem:[%s1352_s0 + $0x2f8] sm:$0xff]  ;;  %585 = vst [vmem:[%s1353_s1 + $0x248] sm:$0xff] %v584_v5  ;;  %v590_v8 = vld [vmem:[%s1352_s0 + $0x48] sm:$0xff] }
  0x25   :  { %587 = vst [vmem:[%s1353_s1 + $0x2b8] sm:$0xff] %v586_v6  ;;  %589 = vst [vmem:[%s1353_s1 + $0x328] sm:$0xff] %v588_v7  ;;  %v592_v9 = vld [vmem:[%s1352_s0 + $0xb8] sm:$0xff]  ;;  %v594_v10 = vld [vmem:[%s1352_s0 + $0x128] sm:$0xff] }
  0x26   :  { %591 = vst [vmem:[%s1353_s1 + $0x28] sm:$0xff] %v590_v8  ;;  %593 = vst [vmem:[%s1353_s1 + $0x98] sm:$0xff] %v592_v9  ;;  %v596_v11 = vld [vmem:[%s1352_s0 + $0x198] sm:$0xff]  ;;  %v598_v12 = vld [vmem:[%s1352_s0 + $0x208] sm:$0xff] }
  0x27   :  { %595 = vst [vmem:[%s1353_s1 + $0x108] sm:$0xff] %v594_v10  ;;  %v600_v13 = vld [vmem:[%s1352_s0 + $0x278] sm:$0xff]  ;;  %597 = vst [vmem:[%s1353_s1 + $0x178] sm:$0xff] %v596_v11  ;;  %v602_v14 = vld [vmem:[%s1352_s0 + $0x2e8] sm:$0xff] }
  0x28   :  { %599 = vst [vmem:[%s1353_s1 + $0x1e8] sm:$0xff] %v598_v12  ;;  %601 = vst [vmem:[%s1353_s1 + $0x258] sm:$0xff] %v600_v13  ;;  %v604_v15 = vld [vmem:[%s1352_s0 + $0x358] sm:$0xff]  ;;  %v608_v17 = vld [vmem:[%s1352_s0 + $0xa8] sm:$0xff] }
  0x29   :  { %v606_v16 = vld [vmem:[%s1352_s0 + $0x38] sm:$0xff]  ;;  %603 = vst [vmem:[%s1353_s1 + $0x2c8] sm:$0xff] %v602_v14  ;;  %605 = vst [vmem:[%s1353_s1 + $0x338] sm:$0xff] %v604_v15  ;;  %v612_v19 = vld [vmem:[%s1352_s0 + $0x188] sm:$0xff] }
  0x2a   :  { %607 = vst [vmem:[%s1353_s1 + $0x38] sm:$0xff] %v606_v16  ;;  %v610_v18 = vld [vmem:[%s1352_s0 + $0x118] sm:$0xff]  ;;  %609 = vst [vmem:[%s1353_s1 + $0xa8] sm:$0xff] %v608_v17  ;;  %v616_v21 = vld [vmem:[%s1352_s0 + $0x268] sm:$0xff] }
  0x2b   :  { %611 = vst [vmem:[%s1353_s1 + $0x118] sm:$0xff] %v610_v18  ;;  %613 = vst [vmem:[%s1353_s1 + $0x188] sm:$0xff] %v612_v19  ;;  %v614_v20 = vld [vmem:[%s1352_s0 + $0x1f8] sm:$0xff]  ;;  %v620_v23 = vld [vmem:[%s1352_s0 + $0x348] sm:$0xff] }
  0x2c   :  { %v618_v22 = vld [vmem:[%s1352_s0 + $0x2d8] sm:$0xff]  ;;  %615 = vst [vmem:[%s1353_s1 + $0x1f8] sm:$0xff] %v614_v20  ;;  %617 = vst [vmem:[%s1353_s1 + $0x268] sm:$0xff] %v616_v21  ;;  %v622_v24 = vld [vmem:[%s1352_s0 + $0x28] sm:$0xff] }
  0x2d   :  { %619 = vst [vmem:[%s1353_s1 + $0x2d8] sm:$0xff] %v618_v22  ;;  %v624_v25 = vld [vmem:[%s1352_s0 + $0x98] sm:$0xff]  ;;  %621 = vst [vmem:[%s1353_s1 + $0x348] sm:$0xff] %v620_v23  ;;  %v626_v26 = vld [vmem:[%s1352_s0 + $0x108] sm:$0xff] }
  0x2e   :  { %623 = vst [vmem:[%s1353_s1 + $0x48] sm:$0xff] %v622_v24  ;;  %625 = vst [vmem:[%s1353_s1 + $0xb8] sm:$0xff] %v624_v25  ;;  %v628_v27 = vld [vmem:[%s1352_s0 + $0x178] sm:$0xff]  ;;  %v630_v28 = vld [vmem:[%s1352_s0 + $0x1e8] sm:$0xff] }
  0x2f   :  { %627 = vst [vmem:[%s1353_s1 + $0x128] sm:$0xff] %v626_v26  ;;  %629 = vst [vmem:[%s1353_s1 + $0x198] sm:$0xff] %v628_v27  ;;  %v632_v29 = vld [vmem:[%s1352_s0 + $0x258] sm:$0xff]  ;;  %v634_v30 = vld [vmem:[%s1352_s0 + $0x2c8] sm:$0xff] }
  0x30   :  { %631 = vst [vmem:[%s1353_s1 + $0x208] sm:$0xff] %v630_v28  ;;  %v636_v31 = vld [vmem:[%s1352_s0 + $0x338] sm:$0xff]  ;;  %633 = vst [vmem:[%s1353_s1 + $0x278] sm:$0xff] %v632_v29  ;;  %v640_v33 = vld [vmem:[%s1352_s0 + $0x88] sm:$0xff] }
  0x31   :  { %635 = vst [vmem:[%s1353_s1 + $0x2e8] sm:$0xff] %v634_v30  ;;  %637 = vst [vmem:[%s1353_s1 + $0x358] sm:$0xff] %v636_v31  ;;  %v638_v32 = vld [vmem:[%s1352_s0 + $0x18] sm:$0xff]  ;;  %v644_v35 = vld [vmem:[%s1352_s0 + $0x168] sm:$0xff] }
  0x32   :  { %v642_v34 = vld [vmem:[%s1352_s0 + $0xf8] sm:$0xff]  ;;  %639 = vst [vmem:[%s1353_s1 + $0x58] sm:$0xff] %v638_v32  ;;  %641 = vst [vmem:[%s1353_s1 + $0xc8] sm:$0xff] %v640_v33  ;;  %v648_v37 = vld [vmem:[%s1352_s0 + $0x248] sm:$0xff] }
  0x33   :  { %643 = vst [vmem:[%s1353_s1 + $0x138] sm:$0xff] %v642_v34  ;;  %v646_v36 = vld [vmem:[%s1352_s0 + $0x1d8] sm:$0xff]  ;;  %645 = vst [vmem:[%s1353_s1 + $0x1a8] sm:$0xff] %v644_v35  ;;  %v652_v39 = vld [vmem:[%s1352_s0 + $0x328] sm:$0xff] }
  0x34   :  { %647 = vst [vmem:[%s1353_s1 + $0x218] sm:$0xff] %v646_v36  ;;  %649 = vst [vmem:[%s1353_s1 + $0x288] sm:$0xff] %v648_v37  ;;  %v650_v38 = vld [vmem:[%s1352_s0 + $0x2b8] sm:$0xff]  ;;  %v654_v40 = vld [vmem:[%s1352_s0 + $0x8] sm:$0xff] }
  0x35   :  { %651 = vst [vmem:[%s1353_s1 + $0x2f8] sm:$0xff] %v650_v38  ;;  %653 = vst [vmem:[%s1353_s1 + $0x368] sm:$0xff] %v652_v39  ;;  %v656_v41 = vld [vmem:[%s1352_s0 + $0x78] sm:$0xff]  ;;  %v658_v42 = vld [vmem:[%s1352_s0 + $0xe8] sm:$0xff] }
  0x36   :  { %655 = vst [vmem:[%s1353_s1 + $0x68] sm:$0xff] %v654_v40  ;;  %v660_v43 = vld [vmem:[%s1352_s0 + $0x158] sm:$0xff]  ;;  %657 = vst [vmem:[%s1353_s1 + $0xd8] sm:$0xff] %v656_v41  ;;  %v662_v44 = vld [vmem:[%s1352_s0 + $0x1c8] sm:$0xff] }
  0x37   :  { %659 = vst [vmem:[%s1353_s1 + $0x148] sm:$0xff] %v658_v42  ;;  %661 = vst [vmem:[%s1353_s1 + $0x1b8] sm:$0xff] %v660_v43  ;;  %v664_v45 = vld [vmem:[%s1352_s0 + $0x238] sm:$0xff]  ;;  %v666_v46 = vld [vmem:[%s1352_s0 + $0x2a8] sm:$0xff] }
  0x38   :  { %663 = vst [vmem:[%s1353_s1 + $0x228] sm:$0xff] %v662_v44  ;;  %665 = vst [vmem:[%s1353_s1 + $0x298] sm:$0xff] %v664_v45  ;;  %v668_v47 = vld [vmem:[%s1352_s0 + $0x318] sm:$0xff] }
  0x39   :  { %667 = vst [vmem:[%s1353_s1 + $0x308] sm:$0xff] %v666_v46  ;;  %669 = vst [vmem:[%s1353_s1 + $0x378] sm:$0xff] %v668_v47 }

// kernel: a_call__.5
= control target key start
LH: loop header
LB: loop body
LE: loop exit
PB: predicated region body
PF: predicated region fallthrough
CT: control target
= control target key end

     0   :  { %s544_s9 = smov 0   ;;  %s546_s10 = smov 0   ;;  %s618_s0 = inlined_call_operand.vmem [shape: f32[16,16], index: 0, kind: input, shape index: {}]   ;;  %s619_s1 = inlined_call_operand.vmem [shape: f32[2,4,16,64], index: 1, kind: input, shape index: {}]   ;;  %s620_s2 = inlined_call_operand.vmem [shape: f32[4,16,64], index: 2, kind: output, shape index: {}]  }
   0x1   :  { %s548_s11 = smov 0   ;;  %s550_s12 = smov 0  }
   0x2   :  { %s552_s13 = smov 0  }
   0x3 LB: > { %s24_s14 = sadd.s32 1, %s523_s12  ;;  %p61_p1 = scmp.ne.s32.totalorder %s515_s10, %s511_s9  ;;  %s527_s13 = sphi %s552_s13, %s12_s13   ;;  %s523_s12 = sphi %s550_s12, %s624_s12   ;;  %s519_s11 = sphi %s548_s11, %s623_s11   ;;  %s515_s10 = sphi %s546_s10, %s622_s10   ;;  %s511_s9 = sphi %s544_s9, %s621_s9  }
   0x4   : > { %p26_p0 = scmp.ge.s32.totalorder %s24_s14, 4  ;;  %p62_p2 = scmp.eq.s32.totalorder %s527_s13, 0 }
   0x5   : > { %s54_s16 = sadd.s32 1, %s515_s10  ;;  %p414_p5 = scmp.ge.s32.totalorder %s527_s13, 4 }
   0x6   : > { %s626_s14 = smov (%p26_p0, %s24_s14), 0  ;;  %p63_p3 = por %p62_p2, %p61_p1 }
   0x7   : > { %s49_s15 = ssub.s32 %s523_s12, %s626_s14  ;;  %118 = sbr.rel (%p414_p5) target bundleno = 21 (0x15), region = 20 }
   0x8   : > { %p52_p4 = scmp.eq.s32.totalorder %s49_s15, 0 }
   0xa   : > { %s579_s17 = scalar_select %p52_p4, %s515_s10, %s54_s16  }
   0xe   : > { %121 = sbr.rel (!%p63_p3) target bundleno = 21 (0x15), region = 24  ;;  %s123_s18 = sand.u32 (%p63_p3), 1, %s515_s10  }
   0xf   : > { %s428_s19 = sshll.u32 (%p63_p3), %s523_s12, 4  ;;  %s415_s20 = sshll.u32 (%p63_p3), %s123_s18, 5 }
  0x10   : > { %s129_s23 = scalar_lea.vmem (%p63_p3), %s619_s1, %s428_s19  ;;  %s125_s24 = scalar_lea.vmem (%p63_p3), [#allocation2], %s415_s20 }
  0x11   : > { %v163_v0 = vld [vmem:[%s129_s23] sm:$0xff] (%p63_p3)  ;;  %v165_v1 = vld [vmem:[%s129_s23 + $0x8] sm:$0xff] (%p63_p3) }
  0x12   : > { %v167_v2 = vld [vmem:[%s129_s23 + $0x40] sm:$0xff] (%p63_p3)  ;;  %164 = vst [vmem:[%s125_s24] sm:$0xff] (%p63_p3), %v163_v0  ;;  %166 = vst [vmem:[%s125_s24 + $0x8] sm:$0xff] (%p63_p3), %v165_v1  ;;  %v169_v3 = vld [vmem:[%s129_s23 + $0x48] sm:$0xff] (%p63_p3) }
  0x13   : > { %168 = vst [vmem:[%s125_s24 + $0x10] sm:$0xff] (%p63_p3), %v167_v2  ;;  %170 = vst [vmem:[%s125_s24 + $0x18] sm:$0xff] (%p63_p3), %v169_v3 }
  0x15 PF: > { %p418_p6 = scmp.ge.s32.totalorder %s527_s13, 1  ;;  %p175_p7 = scmp.lt.s32.totalorder %s527_s13, 5 }
  0x17   : > { %p176_p8 = pnand %p418_p6, %p175_p7 }
  0x18   : > { %s182_s25 = sand.u32 (!%p176_p8), 1, %s511_s9   ;;  %v239_v4 = vld [vmem:[%s618_s0] sm:$0xff] (!%p176_p8)  ;;  %vm241_vm0 = vcmask (!%p176_p8), 130048   ;;  %v240_v26 = vld [vmem:[%s618_s0 + $0x8] sm:$0xff] (!%p176_p8)  ;;  %p206_p9 = scmp.lt.s32.totalorder (!%p176_p8), %s519_s11, 3  ;;  %vm323_vm5 = vcmask (!%p176_p8), 523264  }
  0x19   : > { %179 = sbr.rel (%p176_p8) target bundleno = 268 (0x10c), region = 62  ;;  %s419_s28 = sshll.u32 (!%p176_p8), %s182_s25, 5  ;;  %438 = vmatprep.mubr.msk.f32.mxu0 (!%p176_p8), %vm241_vm0, %v239_v4 }
  0x1a   : > { %s184_s29 = scalar_lea.vmem (!%p176_p8), [#allocation2], %s419_s28 }
  0x1b   : > { %v214_v5 = vld [vmem:[%s184_s29] sm:$0xff] (!%p176_p8)  ;;  %v215_v6 = vld [vmem:[%s184_s29 + $0x8] sm:$0xff] (!%p176_p8)  ;;  %v422_v7 = vld [vmem:[%s184_s29 + $0x10] sm:$0xff] (!%p176_p8) }
  0x1c   : > { %v423_v8 = vld [vmem:[%s184_s29 + $0x18] sm:$0xff] (!%p176_p8)  ;;  %v219_v9 = vmul.f32 (!%p176_p8), %v214_v5, %v214_v5  ;;  %v220_v10 = vmul.f32 (!%p176_p8), %v215_v6, %v215_v6  ;;  %v221_v11 = vmul.f32 (!%p176_p8), %v422_v7, %v422_v7 }
  0x1d   : > { %v222_v12 = vmul.f32 (!%p176_p8), %v423_v8, %v423_v8 }
  0x1e   : > { %v223_v13 = vadd.f32 (!%p176_p8), %v221_v11, %v219_v9 }
  0x1f   : > { %v224_v14 = vadd.f32 (!%p176_p8), %v222_v12, %v220_v10 }
  0x20   : > { %485 = vrsqrt.f32 %v223_v13  ;;  %vm227_vm1 = vcmp.eq.f32.partialorder %v223_v13, inf  ;;  %v230_v16 = vand.u32 2147483648, %v223_v13  ;;  %vm229_vm2 = vcmp.eq.f32.partialorder %v223_v13, 0.0  ;;  %s628_s11 = smov (!%p206_p9, %s519_s11), 3 }
  0x21   : > { %487 = vrsqrt.f32 %v224_v14  ;;  %vm234_vm3 = vcmp.eq.f32.partialorder %v224_v14, inf  ;;  %v237_v19 = vand.u32 2147483648, %v224_v14  ;;  %vm236_vm4 = vcmp.eq.f32.partialorder %v224_v14, 0.0  ;;  %s429_s4 = sshll.u32 %s628_s11, 4 }
  0x22   : > { %s213_s7 = scalar_lea.vmem %s620_s2, %s429_s4 }
  0x2a   : > { %v486_v15 = vpop.eup %485 }
  0x2b   : > { %v488_v17 = vpop.eup %487  ;;  %v226_v18 = vmul.f32 %v486_v15, %v223_v13 }
  0x2c   : > { %v233_v20 = vmul.f32 %v488_v17, %v224_v14 }
  0x2d   : > { %v228_v21 = vsel %vm227_vm1, %v223_v13, %v226_v18 }
  0x2e   : > { %v231_v22 = vsel %vm229_vm2, %v230_v16, %v228_v21  ;;  %v235_v23 = vsel %vm234_vm3, %v224_v14, %v233_v20 }
  0x2f   : > { %v238_v24 = vsel %vm236_vm4, %v237_v19, %v235_v23 }
  0x30   : > { %v441_v25 = vpack.c.bf16 %v238_v24, %v231_v22 }
  0x32   : > { %442 = vmatprep.subr.bf16.mxu0 %v441_v25 }
  0x33   : > { %444 = vmatpush3.bf16.msra.mxu0 %v441_v25 }
  0x36   : > { %439 = vmatmul.mubr.msk.f32.vlgmr.msra.gmra.mrb[0].mxu0 %vm241_vm0, %v240_v26 }
 0x109   : > { %v440_v27 = vpop.f32.mrb[0].mxu0 }
 0x10a   : > { %325 = vst.msk [vmem:[%s213_s7 + $0x8] sm:$0xff] %vm323_vm5, %v440_v27  ;;  %v314_v28 = vpop.f32.mrb[1].mxu0 }
 0x10b   : > { %324 = vst.msk [vmem:[%s213_s7] sm:$0xff] %vm323_vm5, %v314_v28 }
 0x10c PF: > { %s12_s13 = sadd.s32 1, %s527_s13   ;;  %s621_s9 = smov %s515_s10 }
 0x10d   : > { %p9_p10 = scmp.ge.s32.totalorder %s12_s13, 6   ;;  %s622_s10 = smov %s579_s17 }
 0x10e   : > { %s623_s11 = smov %s523_s12  ;;  %s624_s12 = smov %s626_s14 }
 0x10f   :  { %11 = sbr.rel (!%p9_p10) target bundleno = 3 (0x3), region = 102 }

</bundles_post_ra>
